<compile_context>
chip_gen: v7x
topology: tpu7x:2x2x1
jax: 0.10.0
libtpu: 0.0.40
codegen_flags: <defaults>
</compile_context>

<pallas_src>
import math

import jax
import jax.numpy as jnp
from jax.experimental import pallas as pl
from jax.experimental.pallas import tpu as pltpu


def encoder_layer(x, mask, params, n_heads):
    B, S, D = x.shape
    F = params["w1"].shape[1]
    dh = D // n_heads
    scale = 1.0 / math.sqrt(dh)
    bf16 = jnp.bfloat16

    # ---- HBM-side weight preprocessing (zero in-kernel cost) -------------
    wq = (params["wq"] * scale).astype(bf16)           # 1/sqrt(dh) folded into Q
    bq = (params["bq"] * scale).astype(jnp.float32)    # (1, D)
    wk = params["wk"].astype(bf16)
    wv = params["wv"].astype(bf16)
    wo = params["wo"].astype(bf16)
    w1 = params["w1"].astype(bf16)
    w2 = params["w2"].astype(bf16)

    # Additive mask bias: 0 where attend, -1e9 where masked.  Replaces the
    # per-head compare+select and halves the mask's HBM traffic (bf16).
    mask_bias = ((mask - 1.0) * 1e9).astype(bf16)      # (B, S, S)

    def kernel(x_ref, bias_ref,
               wq_ref, bq_ref, wk_ref, bk_ref, wv_ref, bv_ref,
               wo_ref, bo_ref, w1_ref, b1_ref, w2_ref, b2_ref,
               g1_ref, be1_ref, g2_ref, be2_ref, out_ref):
        x_f32 = x_ref[0]                               # (S, D) f32 (residual/LN)
        xb = x_f32.astype(bf16)                        # MXU operand precision

        # Full-width projections: (S,D)@(D,D) keeps the MXU contraction depth
        # and output width full (vs. per-head dh-wide matmuls).
        q = jnp.dot(xb, wq_ref[...], preferred_element_type=jnp.float32) + bq_ref[...]
        k = jnp.dot(xb, wk_ref[...], preferred_element_type=jnp.float32) + bk_ref[...]
        v = jnp.dot(xb, wv_ref[...], preferred_element_type=jnp.float32) + bv_ref[...]

        # Split heads: (S, D) -> (H, S, dh).
        def to_heads(t):
            return jnp.transpose(t.reshape(S, n_heads, dh), (1, 0, 2)).astype(bf16)

        qh, kh, vh = to_heads(q), to_heads(k), to_heads(v)

        # All heads in one batched matmul: scores (H, S, S), f32 accumulation.
        scores = jax.lax.dot_general(
            qh, kh, (((2,), (2,)), ((0,), (0,))),
            preferred_element_type=jnp.float32)
        scores = scores + bias_ref[0].astype(jnp.float32)[None, :, :]

        # TODO(synk): for long S, tile the KV axis (flash-style online softmax)
        # instead of materializing the full (H, S, S) score block in VMEM.
        m = jnp.max(scores, axis=-1, keepdims=True)
        e = jnp.exp(scores - m)                        # unnormalized probs in [0, 1]
        denom = jnp.sum(e, axis=-1, keepdims=True)

        # PV with unnormalized probs; normalize the small (H,S,dh) context
        # instead of the (H,S,S) matrix (saves H*S^2 VPU multiplies).
        ctx = jax.lax.dot_general(
            e.astype(bf16), vh, (((2,), (1,)), ((0,), (0,))),
            preferred_element_type=jnp.float32)        # (H, S, dh)
        ctx = ctx * pl.reciprocal(denom, approx=True)

        # Merge heads; single full-depth (S,D)@(D,D) output projection.
        ctx_sd = jnp.transpose(ctx, (1, 0, 2)).reshape(S, D).astype(bf16)
        attn_out = (jnp.dot(ctx_sd, wo_ref[...], preferred_element_type=jnp.float32)
                    + bo_ref[...])

        def layer_norm(y, gamma, beta):
            mu = jnp.mean(y, axis=-1, keepdims=True)
            d = y - mu
            var = jnp.mean(d * d, axis=-1, keepdims=True)
            return d * jax.lax.rsqrt(var + 1e-5) * gamma + beta

        # TODO(synk): nn.Dropout treated as identity (inference-mode forward).
        r1 = layer_norm(x_f32 + attn_out, g1_ref[...], be1_ref[...])

        # TODO(synk): for long S / large F, tile the FFN over row chunks with an
        # f32 accumulator instead of holding the full (S, F) intermediate.
        h1 = jnp.dot(r1.astype(bf16), w1_ref[...],
                     preferred_element_type=jnp.float32) + b1_ref[...]
        h1 = jnp.maximum(h1, 0.0)
        ff = jnp.dot(h1.astype(bf16), w2_ref[...],
                     preferred_element_type=jnp.float32) + b2_ref[...]

        r2 = layer_norm(r1 + ff, g2_ref[...], be2_ref[...])
        out_ref[0] = r2.astype(out_ref.dtype)

    # Weights/biases use constant index maps: the block index never changes
    # across the (B,) grid, so Pallas DMAs them from HBM exactly once.
    def const_spec(shape):
        zeros = (0,) * len(shape)
        return pl.BlockSpec(shape, lambda b, _z=zeros: _z)

    grid_spec = pltpu.PrefetchScalarGridSpec(
        num_scalar_prefetch=0,
        grid=(B,),
        in_specs=[
            pl.BlockSpec((1, S, D), lambda b: (b, 0, 0)),   # x
            pl.BlockSpec((1, S, S), lambda b: (b, 0, 0)),   # mask bias (bf16)
            const_spec((D, D)), const_spec((1, D)),         # wq (pre-scaled), bq
            const_spec((D, D)), const_spec((1, D)),         # wk, bk
            const_spec((D, D)), const_spec((1, D)),         # wv, bv
            const_spec((D, D)), const_spec((1, D)),         # wo, bo
            const_spec((D, F)), const_spec((1, F)),         # w1, b1
            const_spec((F, D)), const_spec((1, D)),         # w2, b2
            const_spec((1, D)), const_spec((1, D)),         # ln1 gamma, beta
            const_spec((1, D)), const_spec((1, D)),         # ln2 gamma, beta
        ],
        out_specs=pl.BlockSpec((1, S, D), lambda b: (b, 0, 0)),
    )

    # Explicit scoped-VMEM budget sized from the actual block footprint
    # (v5e default is only 16 MiB; v7x physical is 64 MiB — stay well inside).
    vmem_est = (
        2 * (S * D * 4)                                  # x block (double-buffered)
        + 2 * (S * S * 2)                                # mask bias block
        + 2 * (S * D * 4)                                # output block
        + 2 * ((4 * D * D + 2 * D * F) * 2)              # bf16 weights
        + 2 * ((8 * D + F) * 4)                          # biases + LN params
        + (3 * S * D + 2 * n_heads * S * S
           + n_heads * S * dh + 2 * S * F + 4 * S * D) * 4   # live intermediates
    )
    vmem_limit = min(max(int(vmem_est * 2), 16 << 20), 48 << 20)

    flops = 2 * B * S * (4 * D * D + 2 * D * F + 2 * S * D)
    bytes_accessed = (B * S * D * 4 + B * S * S * 2      # activations + mask in
                      + (4 * D * D + 2 * D * F) * 2      # bf16 weights (fetched once)
                      + (8 * D + F) * 4                  # biases + LN params
                      + B * S * D * 4)                   # output
    cost = pl.CostEstimate(flops=int(flops),
                           transcendentals=int(B * n_heads * S * S),
                           bytes_accessed=int(bytes_accessed))

    return pl.pallas_call(
        kernel,
        out_shape=jax.ShapeDtypeStruct((B, S, D), jnp.float32),
        grid_spec=grid_spec,
        compiler_params=pltpu.CompilerParams(
            dimension_semantics=("parallel",),
            vmem_limit_bytes=vmem_limit),
        cost_estimate=cost,
    )(x, mask_bias,
      wq, bq, wk, params["bk"], wv, params["bv"],
      wo, params["bo"],
      w1, params["b1"], w2, params["b2"],
      params["g1"], params["be1"], params["g2"], params["be2"])


def reference_encoder_layer(x, mask, p, n_heads):
    """Pure-JAX f32 reference mirroring the PyTorch forward (dropout = identity)."""
    B, S, D = x.shape
    dh = D // n_heads
    q = x @ p["wq"] + p["bq"][0]
    k = x @ p["wk"] + p["bk"][0]
    v = x @ p["wv"] + p["bv"][0]
    qh = q.reshape(B, S, n_heads, dh).transpose(0, 2, 1, 3)
    kh = k.reshape(B, S, n_heads, dh).transpose(0, 2, 1, 3)
    vh = v.reshape(B, S, n_heads, dh).transpose(0, 2, 1, 3)
    scores = jnp.einsum("bhqd,bhkd->bhqk", qh, kh) / math.sqrt(dh)
    scores = jnp.where(mask[:, None, :, :] > 0.0, scores, -1e9)
    probs = jax.nn.softmax(scores, axis=-1)
    ctx = jnp.einsum("bhqk,bhkd->bhqd", probs, vh)
    ctx = ctx.transpose(0, 2, 1, 3).reshape(B, S, D)
    attn_out = ctx @ p["wo"] + p["bo"][0]

    def ln(y, g, b):
        mu = jnp.mean(y, axis=-1, keepdims=True)
        var = jnp.mean((y - mu) ** 2, axis=-1, keepdims=True)
        return (y - mu) * jax.lax.rsqrt(var + 1e-5) * g[0] + b[0]

    r1 = ln(x + attn_out, p["g1"], p["be1"])
    ff = jnp.maximum(r1 @ p["w1"] + p["b1"][0], 0.0) @ p["w2"] + p["b2"][0]
    return ln(r1 + ff, p["g2"], p["be2"])


if __name__ == "__main__":
    B, S, D, H, F = 2, 8, 32, 4, 64  # dim=32, n_heads=4, ff_dim=64, dropout unused

    key = jax.random.PRNGKey(0)
    ks = jax.random.split(key, 12)

    def w(k, shape, scale=0.05):
        return (scale * jax.random.normal(k, shape)).astype(jnp.float32)

    params = {
        "wq": w(ks[0], (D, D)), "bq": w(ks[1], (1, D)),
        "wk": w(ks[2], (D, D)), "bk": w(ks[3], (1, D)),
        "wv": w(ks[4], (D, D)), "bv": w(ks[5], (1, D)),
        "wo": w(ks[6], (D, D)), "bo": w(ks[7], (1, D)),
        "w1": w(ks[8], (D, F)), "b1": w(ks[9], (1, F)),
        "w2": w(ks[10], (F, D)), "b2": jnp.zeros((1, D), jnp.float32),
        "g1": jnp.ones((1, D), jnp.float32), "be1": jnp.zeros((1, D), jnp.float32),
        "g2": jnp.ones((1, D), jnp.float32), "be2": jnp.zeros((1, D), jnp.float32),
    }

    xkey, mkey = jax.random.split(ks[11])
    x = jax.random.normal(xkey, (B, S, D), dtype=jnp.float32)
    # causal-style mask: lower-triangular (1 = attend), broadcast per batch
    mask = jnp.tril(jnp.ones((S, S), jnp.float32))[None].repeat(B, axis=0)

    out = jax.block_until_ready(encoder_layer(x, mask, params, n_heads=H))
    ref = reference_encoder_layer(x, mask, params, n_heads=H)

    assert out.shape == (B, S, D)
    err = float(jnp.max(jnp.abs(out - ref)))
    # bf16 matmul operands (f32 accumulation) + approx reciprocal vs pure-f32 ref.
    assert err < 3e-2, f"max abs diff {err}"

    print("KERNEL_OK")
</pallas_src>

<mosaic_0001>
module attributes {stable_mosaic.version = 11 : i64} {
  func.func @kernel(%arg0: i32, %arg1: memref<1x8x32xf32, #tpu.memory_space<vmem>>, %arg2: memref<1x8x8xbf16, #tpu.memory_space<vmem>>, %arg3: memref<32x32xbf16, #tpu.memory_space<vmem>>, %arg4: memref<1x32xf32, #tpu.memory_space<vmem>>, %arg5: memref<32x32xbf16, #tpu.memory_space<vmem>>, %arg6: memref<1x32xf32, #tpu.memory_space<vmem>>, %arg7: memref<32x32xbf16, #tpu.memory_space<vmem>>, %arg8: memref<1x32xf32, #tpu.memory_space<vmem>>, %arg9: memref<32x32xbf16, #tpu.memory_space<vmem>>, %arg10: memref<1x32xf32, #tpu.memory_space<vmem>>, %arg11: memref<32x64xbf16, #tpu.memory_space<vmem>>, %arg12: memref<1x64xf32, #tpu.memory_space<vmem>>, %arg13: memref<64x32xbf16, #tpu.memory_space<vmem>>, %arg14: memref<1x32xf32, #tpu.memory_space<vmem>>, %arg15: memref<1x32xf32, #tpu.memory_space<vmem>>, %arg16: memref<1x32xf32, #tpu.memory_space<vmem>>, %arg17: memref<1x32xf32, #tpu.memory_space<vmem>>, %arg18: memref<1x32xf32, #tpu.memory_space<vmem>>, %arg19: memref<1x8x32xf32, #tpu.memory_space<vmem>>) attributes {dimension_semantics = [#tpu.dimension_semantics<parallel>], iteration_bounds = array<i64: 2>, scalar_prefetch = 0 : i64, scratch_operands = 0 : i64, tpu.core_type = #tpu.core_type<tc>, window_params = [{transform_indices = @transform_0, window_bounds = array<i64: 1, 8, 32>}, {transform_indices = @transform_1, window_bounds = array<i64: 1, 8, 8>}, {pipeline_mode = #tpu.pipeline_mode<synchronous>, transform_indices = @transform_2, window_bounds = array<i64: 32, 32>}, {pipeline_mode = #tpu.pipeline_mode<synchronous>, transform_indices = @transform_3, window_bounds = array<i64: 1, 32>}, {pipeline_mode = #tpu.pipeline_mode<synchronous>, transform_indices = @transform_4, window_bounds = array<i64: 32, 32>}, {pipeline_mode = #tpu.pipeline_mode<synchronous>, transform_indices = @transform_5, window_bounds = array<i64: 1, 32>}, {pipeline_mode = #tpu.pipeline_mode<synchronous>, transform_indices = @transform_6, window_bounds = array<i64: 32, 32>}, {pipeline_mode = #tpu.pipeline_mode<synchronous>, transform_indices = @transform_7, window_bounds = array<i64: 1, 32>}, {pipeline_mode = #tpu.pipeline_mode<synchronous>, transform_indices = @transform_8, window_bounds = array<i64: 32, 32>}, {pipeline_mode = #tpu.pipeline_mode<synchronous>, transform_indices = @transform_9, window_bounds = array<i64: 1, 32>}, {pipeline_mode = #tpu.pipeline_mode<synchronous>, transform_indices = @transform_10, window_bounds = array<i64: 32, 64>}, {pipeline_mode = #tpu.pipeline_mode<synchronous>, transform_indices = @transform_11, window_bounds = array<i64: 1, 64>}, {pipeline_mode = #tpu.pipeline_mode<synchronous>, transform_indices = @transform_12, window_bounds = array<i64: 64, 32>}, {pipeline_mode = #tpu.pipeline_mode<synchronous>, transform_indices = @transform_13, window_bounds = array<i64: 1, 32>}, {pipeline_mode = #tpu.pipeline_mode<synchronous>, transform_indices = @transform_14, window_bounds = array<i64: 1, 32>}, {pipeline_mode = #tpu.pipeline_mode<synchronous>, transform_indices = @transform_15, window_bounds = array<i64: 1, 32>}, {pipeline_mode = #tpu.pipeline_mode<synchronous>, transform_indices = @transform_16, window_bounds = array<i64: 1, 32>}, {pipeline_mode = #tpu.pipeline_mode<synchronous>, transform_indices = @transform_17, window_bounds = array<i64: 1, 32>}, {transform_indices = @transform_18, window_bounds = array<i64: 1, 8, 32>}]} {
    %c0 = arith.constant 0 : index
    %c0_0 = arith.constant 0 : index
    %c0_1 = arith.constant 0 : index
    %0 = vector.load %arg1[%c0, %c0_0, %c0_1] : memref<1x8x32xf32, #tpu.memory_space<vmem>>, vector<1x8x32xf32>
    %1 = vector.shape_cast %0 : vector<1x8x32xf32> to vector<8x32xf32>
    %2 = arith.truncf %1 : vector<8x32xf32> to vector<8x32xbf16>
    %c0_2 = arith.constant 0 : index
    %c0_3 = arith.constant 0 : index
    %3 = vector.load %arg3[%c0_2, %c0_3] : memref<32x32xbf16, #tpu.memory_space<vmem>>, vector<32x32xbf16>
    %cst = arith.constant dense<0.000000e+00> : vector<8x32xf32>
    %4 = tpu.matmul %2, %3, %cst {dimension_numbers = #tpu.dot_dimension_numbers<[1], [0], [0], [1], [0, 0, 1, 1], [], []>} : vector<8x32xbf16>, vector<32x32xbf16>, vector<8x32xf32> -> vector<8x32xf32>
    %c0_4 = arith.constant 0 : index
    %c0_5 = arith.constant 0 : index
    %5 = vector.load %arg4[%c0_4, %c0_5] : memref<1x32xf32, #tpu.memory_space<vmem>>, vector<1x32xf32>
    %6 = vector.broadcast %5 : vector<1x32xf32> to vector<8x32xf32>
    %7 = arith.addf %4, %6 : vector<8x32xf32>
    %c0_6 = arith.constant 0 : index
    %c0_7 = arith.constant 0 : index
    %8 = vector.load %arg5[%c0_6, %c0_7] : memref<32x32xbf16, #tpu.memory_space<vmem>>, vector<32x32xbf16>
    %cst_8 = arith.constant dense<0.000000e+00> : vector<8x32xf32>
    %9 = tpu.matmul %2, %8, %cst_8 {dimension_numbers = #tpu.dot_dimension_numbers<[1], [0], [0], [1], [0, 0, 1, 1], [], []>} : vector<8x32xbf16>, vector<32x32xbf16>, vector<8x32xf32> -> vector<8x32xf32>
    %c0_9 = arith.constant 0 : index
    %c0_10 = arith.constant 0 : index
    %10 = vector.load %arg6[%c0_9, %c0_10] : memref<1x32xf32, #tpu.memory_space<vmem>>, vector<1x32xf32>
    %11 = vector.broadcast %10 : vector<1x32xf32> to vector<8x32xf32>
    %12 = arith.addf %9, %11 : vector<8x32xf32>
    %c0_11 = arith.constant 0 : index
    %c0_12 = arith.constant 0 : index
    %13 = vector.load %arg7[%c0_11, %c0_12] : memref<32x32xbf16, #tpu.memory_space<vmem>>, vector<32x32xbf16>
    %cst_13 = arith.constant dense<0.000000e+00> : vector<8x32xf32>
    %14 = tpu.matmul %2, %13, %cst_13 {dimension_numbers = #tpu.dot_dimension_numbers<[1], [0], [0], [1], [0, 0, 1, 1], [], []>} : vector<8x32xbf16>, vector<32x32xbf16>, vector<8x32xf32> -> vector<8x32xf32>
    %c0_14 = arith.constant 0 : index
    %c0_15 = arith.constant 0 : index
    %15 = vector.load %arg8[%c0_14, %c0_15] : memref<1x32xf32, #tpu.memory_space<vmem>>, vector<1x32xf32>
    %16 = vector.broadcast %15 : vector<1x32xf32> to vector<8x32xf32>
    %17 = arith.addf %14, %16 : vector<8x32xf32>
    %18 = vector.shape_cast %7 : vector<8x32xf32> to vector<8x4x8xf32>
    %19 = tpu.transpose %18, [1, 0, 2] : vector<8x4x8xf32> -> vector<4x8x8xf32>
    %20 = arith.truncf %19 : vector<4x8x8xf32> to vector<4x8x8xbf16>
    %21 = vector.shape_cast %12 : vector<8x32xf32> to vector<8x4x8xf32>
    %22 = tpu.transpose %21, [1, 0, 2] : vector<8x4x8xf32> -> vector<4x8x8xf32>
    %23 = arith.truncf %22 : vector<4x8x8xf32> to vector<4x8x8xbf16>
    %24 = vector.shape_cast %17 : vector<8x32xf32> to vector<8x4x8xf32>
    %25 = tpu.transpose %24, [1, 0, 2] : vector<8x4x8xf32> -> vector<4x8x8xf32>
    %26 = arith.truncf %25 : vector<4x8x8xf32> to vector<4x8x8xbf16>
    %cst_16 = arith.constant dense<0.000000e+00> : vector<4x8x8xf32>
    %27 = tpu.matmul %20, %23, %cst_16 {dimension_numbers = #tpu.dot_dimension_numbers<[2], [2], [1], [1], [0, 0, 0, 1, 1, 1], [0], [0]>} : vector<4x8x8xbf16>, vector<4x8x8xbf16>, vector<4x8x8xf32> -> vector<4x8x8xf32>
    %c0_17 = arith.constant 0 : index
    %c0_18 = arith.constant 0 : index
    %c0_19 = arith.constant 0 : index
    %28 = vector.load %arg2[%c0_17, %c0_18, %c0_19] : memref<1x8x8xbf16, #tpu.memory_space<vmem>>, vector<1x8x8xbf16>
    %29 = vector.shape_cast %28 : vector<1x8x8xbf16> to vector<8x8xbf16>
    %30 = arith.extf %29 : vector<8x8xbf16> to vector<8x8xf32>
    %31 = vector.shape_cast %30 : vector<8x8xf32> to vector<1x8x8xf32>
    %32 = vector.broadcast %31 : vector<1x8x8xf32> to vector<4x8x8xf32>
    %33 = arith.addf %27, %32 : vector<4x8x8xf32>
    %cst_20 = arith.constant dense<0xFF800000> : vector<4x8xf32>
    %34 = vector.multi_reduction <maximumf>, %33, %cst_20 [2] : vector<4x8x8xf32> to vector<4x8xf32>
    %35 = vector.shape_cast %34 : vector<4x8xf32> to vector<4x8x1xf32>
    %36 = vector.broadcast %35 : vector<4x8x1xf32> to vector<4x8x8xf32>
    %37 = arith.subf %33, %36 : vector<4x8x8xf32>
    %38 = math.exp %37 : vector<4x8x8xf32>
    %cst_21 = arith.constant dense<0.000000e+00> : vector<4x8xf32>
    %39 = vector.multi_reduction <add>, %38, %cst_21 [2] : vector<4x8x8xf32> to vector<4x8xf32>
    %40 = vector.shape_cast %39 : vector<4x8xf32> to vector<4x8x1xf32>
    %41 = arith.truncf %38 : vector<4x8x8xf32> to vector<4x8x8xbf16>
    %cst_22 = arith.constant dense<0.000000e+00> : vector<4x8x8xf32>
    %42 = tpu.matmul %41, %26, %cst_22 {dimension_numbers = #tpu.dot_dimension_numbers<[2], [1], [1], [2], [0, 0, 0, 1, 1, 2], [0], [0]>} : vector<4x8x8xbf16>, vector<4x8x8xbf16>, vector<4x8x8xf32> -> vector<4x8x8xf32>
    %43 = tpu.reciprocal %40 {approx = true} : vector<4x8x1xf32> -> vector<4x8x1xf32>
    %44 = vector.broadcast %43 : vector<4x8x1xf32> to vector<4x8x8xf32>
    %45 = arith.mulf %42, %44 : vector<4x8x8xf32>
    %46 = tpu.transpose %45, [1, 0, 2] : vector<4x8x8xf32> -> vector<8x4x8xf32>
    %47 = vector.shape_cast %46 : vector<8x4x8xf32> to vector<8x32xf32>
    %48 = arith.truncf %47 : vector<8x32xf32> to vector<8x32xbf16>
    %c0_23 = arith.constant 0 : index
    %c0_24 = arith.constant 0 : index
    %49 = vector.load %arg9[%c0_23, %c0_24] : memref<32x32xbf16, #tpu.memory_space<vmem>>, vector<32x32xbf16>
    %cst_25 = arith.constant dense<0.000000e+00> : vector<8x32xf32>
    %50 = tpu.matmul %48, %49, %cst_25 {dimension_numbers = #tpu.dot_dimension_numbers<[1], [0], [0], [1], [0, 0, 1, 1], [], []>} : vector<8x32xbf16>, vector<32x32xbf16>, vector<8x32xf32> -> vector<8x32xf32>
    %c0_26 = arith.constant 0 : index
    %c0_27 = arith.constant 0 : index
    %51 = vector.load %arg10[%c0_26, %c0_27] : memref<1x32xf32, #tpu.memory_space<vmem>>, vector<1x32xf32>
    %52 = vector.broadcast %51 : vector<1x32xf32> to vector<8x32xf32>
    %53 = arith.addf %50, %52 : vector<8x32xf32>
    %54 = arith.addf %1, %53 : vector<8x32xf32>
    %c0_28 = arith.constant 0 : index
    %c0_29 = arith.constant 0 : index
    %55 = vector.load %arg15[%c0_28, %c0_29] : memref<1x32xf32, #tpu.memory_space<vmem>>, vector<1x32xf32>
    %c0_30 = arith.constant 0 : index
    %c0_31 = arith.constant 0 : index
    %56 = vector.load %arg16[%c0_30, %c0_31] : memref<1x32xf32, #tpu.memory_space<vmem>>, vector<1x32xf32>
    %cst_32 = arith.constant dense<0.000000e+00> : vector<8xf32>
    %57 = vector.multi_reduction <add>, %54, %cst_32 [1] : vector<8x32xf32> to vector<8xf32>
    %58 = vector.shape_cast %57 : vector<8xf32> to vector<8x1xf32>
    %cst_33 = arith.constant 3.200000e+01 : f32
    %59 = vector.broadcast %cst_33 : f32 to vector<8x1xf32>
    %60 = arith.divf %58, %59 : vector<8x1xf32>
    %61 = vector.broadcast %60 : vector<8x1xf32> to vector<8x32xf32>
    %62 = arith.subf %54, %61 : vector<8x32xf32>
    %63 = arith.mulf %62, %62 : vector<8x32xf32>
    %cst_34 = arith.constant dense<0.000000e+00> : vector<8xf32>
    %64 = vector.multi_reduction <add>, %63, %cst_34 [1] : vector<8x32xf32> to vector<8xf32>
    %65 = vector.shape_cast %64 : vector<8xf32> to vector<8x1xf32>
    %cst_35 = arith.constant 3.200000e+01 : f32
    %66 = vector.broadcast %cst_35 : f32 to vector<8x1xf32>
    %67 = arith.divf %65, %66 : vector<8x1xf32>
    %cst_36 = arith.constant 9.99999974E-6 : f32
    %68 = vector.broadcast %cst_36 : f32 to vector<8x1xf32>
    %69 = arith.addf %67, %68 : vector<8x1xf32>
    %70 = math.rsqrt %69 : vector<8x1xf32>
    %71 = vector.broadcast %70 : vector<8x1xf32> to vector<8x32xf32>
    %72 = arith.mulf %62, %71 : vector<8x32xf32>
    %73 = vector.broadcast %55 : vector<1x32xf32> to vector<8x32xf32>
    %74 = arith.mulf %72, %73 : vector<8x32xf32>
    %75 = vector.broadcast %56 : vector<1x32xf32> to vector<8x32xf32>
    %76 = arith.addf %74, %75 : vector<8x32xf32>
    %77 = arith.truncf %76 : vector<8x32xf32> to vector<8x32xbf16>
    %c0_37 = arith.constant 0 : index
    %c0_38 = arith.constant 0 : index
    %78 = vector.load %arg11[%c0_37, %c0_38] : memref<32x64xbf16, #tpu.memory_space<vmem>>, vector<32x64xbf16>
    %cst_39 = arith.constant dense<0.000000e+00> : vector<8x64xf32>
    %79 = tpu.matmul %77, %78, %cst_39 {dimension_numbers = #tpu.dot_dimension_numbers<[1], [0], [0], [1], [0, 0, 1, 1], [], []>} : vector<8x32xbf16>, vector<32x64xbf16>, vector<8x64xf32> -> vector<8x64xf32>
    %c0_40 = arith.constant 0 : index
    %c0_41 = arith.constant 0 : index
    %80 = vector.load %arg12[%c0_40, %c0_41] : memref<1x64xf32, #tpu.memory_space<vmem>>, vector<1x64xf32>
    %81 = vector.broadcast %80 : vector<1x64xf32> to vector<8x64xf32>
    %82 = arith.addf %79, %81 : vector<8x64xf32>
    %cst_42 = arith.constant 0.000000e+00 : f32
    %83 = vector.broadcast %cst_42 : f32 to vector<8x64xf32>
    %84 = arith.maximumf %82, %83 : vector<8x64xf32>
    %85 = arith.truncf %84 : vector<8x64xf32> to vector<8x64xbf16>
    %c0_43 = arith.constant 0 : index
    %c0_44 = arith.constant 0 : index
    %86 = vector.load %arg13[%c0_43, %c0_44] : memref<64x32xbf16, #tpu.memory_space<vmem>>, vector<64x32xbf16>
    %cst_45 = arith.constant dense<0.000000e+00> : vector<8x32xf32>
    %87 = tpu.matmul %85, %86, %cst_45 {dimension_numbers = #tpu.dot_dimension_numbers<[1], [0], [0], [1], [0, 0, 1, 1], [], []>} : vector<8x64xbf16>, vector<64x32xbf16>, vector<8x32xf32> -> vector<8x32xf32>
    %c0_46 = arith.constant 0 : index
    %c0_47 = arith.constant 0 : index
    %88 = vector.load %arg14[%c0_46, %c0_47] : memref<1x32xf32, #tpu.memory_space<vmem>>, vector<1x32xf32>
    %89 = vector.broadcast %88 : vector<1x32xf32> to vector<8x32xf32>
    %90 = arith.addf %87, %89 : vector<8x32xf32>
    %91 = arith.addf %76, %90 : vector<8x32xf32>
    %c0_48 = arith.constant 0 : index
    %c0_49 = arith.constant 0 : index
    %92 = vector.load %arg17[%c0_48, %c0_49] : memref<1x32xf32, #tpu.memory_space<vmem>>, vector<1x32xf32>
    %c0_50 = arith.constant 0 : index
    %c0_51 = arith.constant 0 : index
    %93 = vector.load %arg18[%c0_50, %c0_51] : memref<1x32xf32, #tpu.memory_space<vmem>>, vector<1x32xf32>
    %cst_52 = arith.constant dense<0.000000e+00> : vector<8xf32>
    %94 = vector.multi_reduction <add>, %91, %cst_52 [1] : vector<8x32xf32> to vector<8xf32>
    %95 = vector.shape_cast %94 : vector<8xf32> to vector<8x1xf32>
    %cst_53 = arith.constant 3.200000e+01 : f32
    %96 = vector.broadcast %cst_53 : f32 to vector<8x1xf32>
    %97 = arith.divf %95, %96 : vector<8x1xf32>
    %98 = vector.broadcast %97 : vector<8x1xf32> to vector<8x32xf32>
    %99 = arith.subf %91, %98 : vector<8x32xf32>
    %100 = arith.mulf %99, %99 : vector<8x32xf32>
    %cst_54 = arith.constant dense<0.000000e+00> : vector<8xf32>
    %101 = vector.multi_reduction <add>, %100, %cst_54 [1] : vector<8x32xf32> to vector<8xf32>
    %102 = vector.shape_cast %101 : vector<8xf32> to vector<8x1xf32>
    %cst_55 = arith.constant 3.200000e+01 : f32
    %103 = vector.broadcast %cst_55 : f32 to vector<8x1xf32>
    %104 = arith.divf %102, %103 : vector<8x1xf32>
    %cst_56 = arith.constant 9.99999974E-6 : f32
    %105 = vector.broadcast %cst_56 : f32 to vector<8x1xf32>
    %106 = arith.addf %104, %105 : vector<8x1xf32>
    %107 = math.rsqrt %106 : vector<8x1xf32>
    %108 = vector.broadcast %107 : vector<8x1xf32> to vector<8x32xf32>
    %109 = arith.mulf %99, %108 : vector<8x32xf32>
    %110 = vector.broadcast %92 : vector<1x32xf32> to vector<8x32xf32>
    %111 = arith.mulf %109, %110 : vector<8x32xf32>
    %112 = vector.broadcast %93 : vector<1x32xf32> to vector<8x32xf32>
    %113 = arith.addf %111, %112 : vector<8x32xf32>
    %c0_57 = arith.constant 0 : index
    %c0_58 = arith.constant 0 : index
    %c0_59 = arith.constant 0 : index
    %114 = vector.load %arg19[%c0_57, %c0_58, %c0_59] : memref<1x8x32xf32, #tpu.memory_space<vmem>>, vector<1x8x32xf32>
    %115 = vector.shape_cast %114 : vector<1x8x32xf32> to vector<8x32xf32>
    %116 = vector.shape_cast %113 : vector<8x32xf32> to vector<1x8x32xf32>
    tpu.vector_store %arg19[%c0_57, %c0_58, %c0_59], %116 {strides = array<i32>} : memref<1x8x32xf32, #tpu.memory_space<vmem>>, vector<1x8x32xf32>,
    return
  }
  func.func @transform_0(%arg0: i32) -> (i32, i32, i32) {
    %c0_i32 = arith.constant 0 : i32
    %c0_i32_0 = arith.constant 0 : i32
    %c0_i32_1 = arith.constant 0 : i32
    return %arg0, %c0_i32, %c0_i32_0 : i32, i32, i32
  }
  func.func @transform_1(%arg0: i32) -> (i32, i32, i32) {
    %c0_i32 = arith.constant 0 : i32
    %c0_i32_0 = arith.constant 0 : i32
    %c0_i32_1 = arith.constant 0 : i32
    return %arg0, %c0_i32, %c0_i32_0 : i32, i32, i32
  }
  func.func @transform_2(%arg0: i32) -> (i32, i32) {
    %c0_i32 = arith.constant 0 : i32
    %c0_i32_0 = arith.constant 0 : i32
    %c0_i32_1 = arith.constant 0 : i32
    return %c0_i32, %c0_i32_0 : i32, i32
  }
  func.func @transform_3(%arg0: i32) -> (i32, i32) {
    %c0_i32 = arith.constant 0 : i32
    %c0_i32_0 = arith.constant 0 : i32
    %c0_i32_1 = arith.constant 0 : i32
    return %c0_i32, %c0_i32_0 : i32, i32
  }
  func.func @transform_4(%arg0: i32) -> (i32, i32) {
    %c0_i32 = arith.constant 0 : i32
    %c0_i32_0 = arith.constant 0 : i32
    %c0_i32_1 = arith.constant 0 : i32
    return %c0_i32, %c0_i32_0 : i32, i32
  }
  func.func @transform_5(%arg0: i32) -> (i32, i32) {
    %c0_i32 = arith.constant 0 : i32
    %c0_i32_0 = arith.constant 0 : i32
    %c0_i32_1 = arith.constant 0 : i32
    return %c0_i32, %c0_i32_0 : i32, i32
  }
  func.func @transform_6(%arg0: i32) -> (i32, i32) {
    %c0_i32 = arith.constant 0 : i32
    %c0_i32_0 = arith.constant 0 : i32
    %c0_i32_1 = arith.constant 0 : i32
    return %c0_i32, %c0_i32_0 : i32, i32
  }
  func.func @transform_7(%arg0: i32) -> (i32, i32) {
    %c0_i32 = arith.constant 0 : i32
    %c0_i32_0 = arith.constant 0 : i32
    %c0_i32_1 = arith.constant 0 : i32
    return %c0_i32, %c0_i32_0 : i32, i32
  }
  func.func @transform_8(%arg0: i32) -> (i32, i32) {
    %c0_i32 = arith.constant 0 : i32
    %c0_i32_0 = arith.constant 0 : i32
    %c0_i32_1 = arith.constant 0 : i32
    return %c0_i32, %c0_i32_0 : i32, i32
  }
  func.func @transform_9(%arg0: i32) -> (i32, i32) {
    %c0_i32 = arith.constant 0 : i32
    %c0_i32_0 = arith.constant 0 : i32
    %c0_i32_1 = arith.constant 0 : i32
    return %c0_i32, %c0_i32_0 : i32, i32
  }
  func.func @transform_10(%arg0: i32) -> (i32, i32) {
    %c0_i32 = arith.constant 0 : i32
    %c0_i32_0 = arith.constant 0 : i32
    %c0_i32_1 = arith.constant 0 : i32
    return %c0_i32, %c0_i32_0 : i32, i32
  }
  func.func @transform_11(%arg0: i32) -> (i32, i32) {
    %c0_i32 = arith.constant 0 : i32
    %c0_i32_0 = arith.constant 0 : i32
    %c0_i32_1 = arith.constant 0 : i32
    return %c0_i32, %c0_i32_0 : i32, i32
  }
  func.func @transform_12(%arg0: i32) -> (i32, i32) {
    %c0_i32 = arith.constant 0 : i32
    %c0_i32_0 = arith.constant 0 : i32
    %c0_i32_1 = arith.constant 0 : i32
    return %c0_i32, %c0_i32_0 : i32, i32
  }
  func.func @transform_13(%arg0: i32) -> (i32, i32) {
    %c0_i32 = arith.constant 0 : i32
    %c0_i32_0 = arith.constant 0 : i32
    %c0_i32_1 = arith.constant 0 : i32
    return %c0_i32, %c0_i32_0 : i32, i32
  }
  func.func @transform_14(%arg0: i32) -> (i32, i32) {
    %c0_i32 = arith.constant 0 : i32
    %c0_i32_0 = arith.constant 0 : i32
    %c0_i32_1 = arith.constant 0 : i32
    return %c0_i32, %c0_i32_0 : i32, i32
  }
  func.func @transform_15(%arg0: i32) -> (i32, i32) {
    %c0_i32 = arith.constant 0 : i32
    %c0_i32_0 = arith.constant 0 : i32
    %c0_i32_1 = arith.constant 0 : i32
    return %c0_i32, %c0_i32_0 : i32, i32
  }
  func.func @transform_16(%arg0: i32) -> (i32, i32) {
    %c0_i32 = arith.constant 0 : i32
    %c0_i32_0 = arith.constant 0 : i32
    %c0_i32_1 = arith.constant 0 : i32
    return %c0_i32, %c0_i32_0 : i32, i32
  }
  func.func @transform_17(%arg0: i32) -> (i32, i32) {
    %c0_i32 = arith.constant 0 : i32
    %c0_i32_0 = arith.constant 0 : i32
    %c0_i32_1 = arith.constant 0 : i32
    return %c0_i32, %c0_i32_0 : i32, i32
  }
  func.func @transform_18(%arg0: i32) -> (i32, i32, i32) {
    %c0_i32 = arith.constant 0 : i32
    %c0_i32_0 = arith.constant 0 : i32
    %c0_i32_1 = arith.constant 0 : i32
    return %arg0, %c0_i32, %c0_i32_0 : i32, i32, i32
  }
}

</mosaic_0001>

<bundles_post_ra>
// kernel: tpu_custom_call.1
= control target key start
LH: loop header
LB: loop body
LE: loop exit
PB: predicated region body
PF: predicated region fallthrough
CT: control target
= control target key end

     0   :  { %s3486_s0 = inlined_call_operand.vmem [shape: f32[2,8,32], index: 0, kind: input, shape index: {}]   ;;  %s3487_s1 = inlined_call_operand.hbm [shape: bf16[2,8,8], index: 1, kind: input, shape index: {}]   ;;  %s3488_s2 = inlined_call_operand.vmem [shape: bf16[32,32], index: 2, kind: input, shape index: {}]   ;;  %s3489_s3 = inlined_call_operand.vmem [shape: f32[1,32], index: 3, kind: input, shape index: {}]   ;;  %s3490_s4 = inlined_call_operand.vmem [shape: bf16[32,32], index: 4, kind: input, shape index: {}]   ;;  %s3491_s5 = inlined_call_operand.vmem [shape: f32[1,32], index: 5, kind: input, shape index: {}]   ;;  %s3492_s6 = inlined_call_operand.hbm [shape: bf16[32,32], index: 6, kind: input, shape index: {}]   ;;  %s3493_s7 = inlined_call_operand.hbm [shape: f32[1,32], index: 7, kind: input, shape index: {}]   ;;  %s3494_s8 = inlined_call_operand.hbm [shape: bf16[32,32], index: 8, kind: input, shape index: {}]   ;;  %s3495_s9 = inlined_call_operand.hbm [shape: f32[1,32], index: 9, kind: input, shape index: {}]   ;;  %s3496_s10 = inlined_call_operand.vmem [shape: bf16[32,64], index: 10, kind: input, shape index: {}]   ;;  %s3497_s11 = inlined_call_operand.vmem [shape: f32[1,64], index: 11, kind: input, shape index: {}]   ;;  %s3498_s12 = inlined_call_operand.vmem [shape: bf16[64,32], index: 12, kind: input, shape index: {}]   ;;  %s3499_s13 = inlined_call_operand.vmem [shape: f32[1,32], index: 13, kind: input, shape index: {}]   ;;  %s3500_s14 = inlined_call_operand.vmem [shape: f32[1,32], index: 14, kind: input, shape index: {}]   ;;  %s3501_s15 = inlined_call_operand.vmem [shape: f32[1,32], index: 15, kind: input, shape index: {}]   ;;  %s3502_s16 = inlined_call_operand.vmem [shape: f32[1,32], index: 16, kind: input, shape index: {}]   ;;  %s3503_s17 = inlined_call_operand.vmem [shape: f32[1,32], index: 17, kind: input, shape index: {}]   ;;  %s3504_s18 = inlined_call_operand.hbm [shape: f32[2,8,32], index: 18, kind: output, shape index: {}]  }
   0x1   :  { %3511 = sst [smem:[#allocation16_spill]] %s3486_s0 }
   0x2   :  { %3512 = sst [smem:[#allocation17_spill]] %s3487_s1 }
   0x3   :  { %3513 = sst [smem:[#allocation18_spill]] %s3488_s2 }
   0x4   :  { %3514 = sst [smem:[#allocation19_spill]] %s3489_s3 }
   0x5   :  { %3515 = sst [smem:[#allocation20_spill]] %s3492_s6 }
   0x6   :  { %3516 = sst [smem:[#allocation21_spill]] %s3493_s7 }
   0x7   :  { %3517 = sst [smem:[#allocation22_spill]] %s3494_s8 }
   0x8   :  { %3518 = sst [smem:[#allocation23_spill]] %s3497_s11 }
   0x9   :  { %3519 = sst [smem:[#allocation24_spill]] %s3499_s13 }
   0xa   :  { %3520 = sst [smem:[#allocation25_spill]] %s3500_s14 }
   0xb   :  { %3521 = sst [smem:[#allocation26_spill]] %s3501_s15 }
   0xc   :  { %3522 = sst [smem:[#allocation27_spill]] %s3502_s16 }
   0xd   :  { %3523 = sst [smem:[#allocation28_spill]] %s3503_s17 }
   0xe   :  { %3524 = sst [smem:[#allocation29_spill]] %s3504_s18 }
   0xf   :  { %23 = vsyncpa [#allocation3], 0 }
  0x10   :  { %25 = vsyncpa [#allocation3 + $0x1], 0 }
  0x11   :  { %26 = vsyncpa [#allocation6], 0 }
  0x12   :  { %27 = vsyncpa [#allocation9], 0 }
  0x13   :  { %28 = vsyncpa [#allocation4], 0 }
  0x14   :  { %30 = vsyncpa [#allocation4 + $0x1], 0  ;;  %s2963_s27 = smov 0   ;;  %s2965_s28 = smov 0  }
  0x15   :  { %s2967_s29 = smov 0   ;;  %s2969_s30 = smov 0  }
  0x16 LB: > { %s2850_s0 = smov [#allocation5]   ;;  %s2984_s1 = sadd.s32 4294967295, %s2848_s30   ;;  %s2848_s30 = sphi %s2969_s30, %s3559_s30   ;;  %s2844_s29 = sphi %s2967_s29, %s3558_s29   ;;  %s2840_s28 = sphi %s2965_s28, %s3557_s28   ;;  %s2836_s27 = sphi %s2963_s27, %s3556_s27  }
  0x17   : > { %s479_s19 = sshll.u32 %s2850_s0, 4  ;;  %p2297_p0 = scmp.ge.s32.totalorder %s2848_s30, 1  ;;  %s2989_s19 = int_to_ptr.vmem [resolvable:$true] %s479_s19 }
  0x18   : > { %p3508_p1 = scmp.eq.s32.totalorder %s2984_s1, 0  ;;  %p455_p2 = scmp.lt.s32.totalorder %s2848_s30, 3 }
  0x19   : > { %s2851_s21 = smov [#allocation8]   ;;  %s2852_s23 = smov [#allocation7]  }
  0x1a   : > { %p2991_p3 = pnand %p2297_p0, %p455_p2  ;;  %s503_s22 = sshll.u32 %s2851_s21, 4  ;;  %s3004_s22 = int_to_ptr.vmem [resolvable:$true] %s503_s22 }
  0x1b   : > { %s493_s24 = sshll.u32 %s2852_s23, 4  ;;  %s3527_s6 = sld [smem:[#allocation20_spill]]  ;;  %s3006_s24 = int_to_ptr.vmem [resolvable:$true] %s493_s24 }
  0x1c   : > { %s3525_s20 = scalar_select %p2991_p3, 1, 0 }
  0x1d   : > { %p2519_p5 = pneg %p2991_p3 }
  0x1f   : > { %p3000_p6 = pnand %p2519_p5, %p3508_p1 }
  0x21   : > { %s2632_s0 = scalar_lea.hbm %s3527_s6, 256  ;;  %p3016_p8 = pneg %p3000_p6 }
  0x22   : > { %p2633_p7 = scmp.ne.s32.totalorder %s3527_s6, %s2632_s0  ;;  %p2639_p11 = scmp.lt.u32.totalorder %s2632_s0, %s3527_s6 }
  0x24   : > { %p2635_p9 = pnand %p3016_p8, %p2633_p7 }
  0x26   : > { %p2636_p10 = pneg %p2635_p9 }
  0x28   : > { %p2641_p12 = pnand %p2639_p11, %p2636_p10 }
  0x2a   : > { %2644 = shalt.err (!%p2641_p12)
}
  0x2b   : > { %s2645_s17 = scalar_lea.vmem %s2989_s19, 256  ;;  %p2653_p5 = scmp.lt.s32.totalorder %s2989_s19, %s2989_s19 }
  0x2c   : > { %p2646_p13 = scmp.ne.s32.totalorder %s2989_s19, %s2645_s17  ;;  %p2654_p4 = scmp.lt.s32.totalorder %s2645_s17, %s2645_s17 }
  0x2e   : > { %p2648_p0 = pnand %p2646_p13, %p3016_p8  ;;  %p2655_p7 = por %p2654_p4, %p2653_p5 }
  0x30   : > { %p2649_p2 = pneg %p2648_p0 }
  0x32   : > { %p2656_p9 = pnand %p2655_p7, %p2649_p2 }
  0x34   : > { %2659 = shalt.err (!%p2656_p9)
}
  0x35   : > { %s2853_s18 = smov 64   ;;  %s2854_s16 = smov 4  }
  0x36   : > { %2522 = dma.hbm_to_vmem [thread:$0]  (!%p3000_p6), %s3527_s6, 256, %s2989_s19, [#allocation6], %s2853_s18, %s2853_s18, %s2854_s16  }
  0x37   : > { %s3529_s8 = sld [smem:[#allocation22_spill]] }
  0x3d   : > { %s2660_s13 = scalar_lea.hbm %s3529_s8, 256 }
  0x3e   : > { %p2661_p4 = scmp.ne.s32.totalorder %s3529_s8, %s2660_s13  ;;  %p2667_p12 = scmp.lt.u32.totalorder %s2660_s13, %s3529_s8 }
  0x40   : > { %p2663_p10 = pnand %p2661_p4, %p3016_p8 }
  0x42   : > { %p2664_p11 = pneg %p2663_p10 }
  0x44   : > { %p2669_p13 = pnand %p2667_p12, %p2664_p11 }
  0x46   : > { %2672 = shalt.err (!%p2669_p13)
}
  0x47   : > { %s2673_s19 = scalar_lea.vmem %s3004_s22, 256  ;;  %p2681_p7 = scmp.lt.s32.totalorder %s3004_s22, %s3004_s22 }
  0x48   : > { %p2674_p0 = scmp.ne.s32.totalorder %s3004_s22, %s2673_s19  ;;  %p2682_p9 = scmp.lt.s32.totalorder %s2673_s19, %s2673_s19 }
  0x4a   : > { %p2676_p2 = pnand %p2674_p0, %p3016_p8  ;;  %p2683_p4 = por %p2682_p9, %p2681_p7 }
  0x4c   : > { %p2677_p5 = pneg %p2676_p2 }
  0x4e   : > { %p2684_p10 = pnand %p2683_p4, %p2677_p5 }
  0x50   : > { %2687 = shalt.err (!%p2684_p10)
}
  0x51   : > { %2528 = dma.hbm_to_vmem [thread:$0]  (!%p3000_p6), %s3529_s8, 256, %s3004_s22, [#allocation9], %s2853_s18, %s2853_s18, %s2854_s16  }
  0x52   : > { %s3530_s7 = sld [smem:[#allocation21_spill]] }
  0x58   : > { %s2688_s25 = scalar_lea.hbm %s3530_s7, 16 }
  0x59   : > { %p2689_p11 = scmp.ne.s32.totalorder %s3530_s7, %s2688_s25  ;;  %p2695_p0 = scmp.lt.u32.totalorder %s2688_s25, %s3530_s7 }
  0x5b   : > { %p2691_p12 = pnand %p2689_p11, %p3016_p8 }
  0x5d   : > { %p2692_p13 = pneg %p2691_p12 }
  0x5f   : > { %p2697_p2 = pnand %p2695_p0, %p2692_p13 }
  0x61   : > { %2700 = shalt.err (!%p2697_p2)
}
  0x62   : > { %s2701_s22 = scalar_lea.vmem %s3006_s24, 16  ;;  %s2708_s18 = scalar_lea.vmem %s3006_s24, 32 }
  0x63   : > { %p2702_p5 = scmp.ne.s32.totalorder %s3006_s24, %s2701_s22  ;;  %p2709_p4 = scmp.lt.s32.totalorder %s3006_s24, %s3006_s24 }
  0x64   : > { %p2710_p10 = scmp.lt.s32.totalorder %s2708_s18, %s2701_s22 }
  0x65   : > { %p2704_p7 = pnand %p2702_p5, %p3016_p8 }
  0x66   : > { %p2711_p11 = por %p2710_p10, %p2709_p4 }
  0x67   : > { %p2705_p9 = pneg %p2704_p7 }
  0x69   : > { %p2712_p12 = pnand %p2711_p11, %p2705_p9 }
  0x6b   : > { %2715 = shalt.err (!%p2712_p12)
}
  0x6c   : > { %2525 = dma.hbm_to_vmem [thread:$0]  (!%p3000_p6), %s3530_s7, 16, %s3006_s24, [#allocation6]  }
  0x6d   : > { %s2855_s11 = smov [#allocation10]   ;;  %s2716_s25 = scalar_lea.hbm %s3495_s9, 16 }
  0x6e   : > { %s517_s13 = sshll.u32 %s2855_s11, 4  ;;  %p2717_p13 = scmp.ne.s32.totalorder %s3495_s9, %s2716_s25  ;;  %s518_s13 = int_to_ptr.vmem [resolvable:$true] %s517_s13 }
  0x6f   : > { %p2723_p5 = scmp.lt.u32.totalorder %s2716_s25, %s3495_s9 }
  0x70   : > { %p2719_p0 = pnand %p2717_p13, %p3016_p8 }
  0x72   : > { %p2720_p2 = pneg %p2719_p0 }
  0x74   : > { %p2725_p7 = pnand %p2723_p5, %p2720_p2 }
  0x76   : > { %2728 = shalt.err (!%p2725_p7)
}
  0x77   : > { %s2729_s24 = scalar_lea.vmem %s518_s13, 16  ;;  %s2736_s22 = scalar_lea.vmem %s518_s13, 32 }
  0x78   : > { %p2730_p9 = scmp.ne.s32.totalorder %s518_s13, %s2729_s24  ;;  %p2737_p11 = scmp.lt.s32.totalorder %s518_s13, %s518_s13 }
  0x79   : > { %p2738_p12 = scmp.lt.s32.totalorder %s2736_s22, %s2729_s24 }
  0x7a   : > { %p2732_p4 = pnand %p2730_p9, %p3016_p8 }
  0x7b   : > { %p2739_p1 = por %p2738_p12, %p2737_p11 }
  0x7c   : > { %p2733_p10 = pneg %p2732_p4 }
  0x7e   : > { %p2740_p3 = pnand %p2739_p1, %p2733_p10 }
  0x80   : > { %2743 = shalt.err (!%p2740_p3)
}
  0x81   : > { %2531 = dma.hbm_to_vmem [thread:$0]  (!%p3000_p6), %s3495_s9, 16, %s518_s13, [#allocation9]  }
  0x82   : > { %s2296_s21 = sadd.s32 4294967294, %s2848_s30   ;;  %s3104_s2 = sadd.s32 1, %s2848_s30  }
  0x83   : > { %s66_s19 = ssub.s32 %s2848_s30, %s3104_s2  ;;  %s69_s11 = sadd.s32 1, %s2844_s29 }
  0x84   : > { %p67_p1 = scmp.eq.s32.totalorder %s66_s19, 0  ;;  %p76_p3 = scmp.ne.s32.totalorder %s2844_s29, %s2840_s28 }
  0x85   : > { %p77_p8 = scmp.eq.s32.totalorder %s2848_s30, 0  ;;  %p82_p13 = scmp.ne.s32.totalorder %s2840_s28, %s2836_s27 }
  0x86   : > { %s3115_s14 = scalar_select %p67_p1, %s2844_s29, %s69_s11  }
  0x87   : > { %p3117_p0 = por %p77_p8, %p76_p3  ;;  %p3532_p2 = scmp.eq.s32.totalorder %s2984_s1, 0 }
  0x88   : > { %p442_p5 = scmp.eq.s32.totalorder %s2984_s1, 1  ;;  %p448_p7 = scmp.eq.s32.totalorder %s2296_s21, 1 }
  0x89   : > { %p3123_p6 = por %p3532_p2, %p82_p13  ;;  %p2544_p9 = scmp.lt.s32.totalorder %s2848_s30, 2 }
  0x8a   : > { %s559_s25 = sand.u32 1, %s2844_s29   ;;  %p3130_p4 = por %p442_p5, %p76_p3 }
  0x8b   : > { %p3134_p10 = por %p448_p7, %p82_p13  ;;  %s2303_s23 = sshll.u32 %s559_s25, 2 }
  0x8c   : > { %s3534_s26 = scalar_select %p3130_p4, 1, 0 }
  0x8d   : > { %s3535_s0 = scalar_select %p3134_p10, 1, 0 }
  0x8e   : > { %s2304_s17 = sshll.u32 %s2848_s30, 6  ;;  %s3536_s18 = sld [smem:[#allocation17_spill]] }
  0x8f   : > { %s563_s21 = scalar_lea.vmem [#allocation2], %s2303_s23  ;;  %p3148_p11 = pnand %p2544_p9, %p3117_p0 }
  0x90   : > { %s570_s19 = sshll.u32 %s563_s21, 4  ;;  %s560_s6 = scalar_lea.sflag [#allocation3], %s559_s25  ;;  %s3144_s19 = int_to_ptr.vmem [resolvable:$true] %s570_s19 }
  0x91   : > { %p2746_p1 = pneg %p3148_p11 }
  0x94   : > { %s3142_s16 = scalar_lea.hbm %s3536_s18, %s2304_s17  ;;  %s2749_s24 = scalar_lea.hbm %s3536_s18, 128 }
  0x95   : > { %s2744_s7 = scalar_lea.hbm %s3142_s16, 64  ;;  %p2750_p13 = scmp.lt.u32.totalorder %s3142_s16, %s3536_s18 }
  0x96   : > { %p2745_p12 = scmp.ne.s32.totalorder %s3142_s16, %s2744_s7  ;;  %p2751_p0 = scmp.lt.u32.totalorder %s2749_s24, %s2744_s7 }
  0x97   : > { %p2753_p5 = scmp.lt.u32.totalorder %s2744_s7, %s3142_s16 }
  0x98   : > { %p2747_p3 = pnand %p2746_p1, %p2745_p12  ;;  %p2752_p2 = por %p2751_p0, %p2750_p13 }
  0x9a   : > { %p2748_p8 = pneg %p2747_p3  ;;  %p2754_p7 = por %p2753_p5, %p2752_p2 }
  0x9c   : > { %p2755_p9 = pnand %p2754_p7, %p2748_p8 }
  0x9e   : > { %2758 = shalt.err (!%p2755_p9)
}
  0x9f   : > { %s2759_s25 = scalar_lea.vmem %s3144_s19, 64  ;;  %s2856_s21 = smov [#allocation2]  }
  0xa0   : > { %p2760_p12 = scmp.ne.s32.totalorder %s3144_s19, %s2759_s25  ;;  %s2764_s23 = sshll.u32 %s2856_s21, 4  ;;  %s2765_s23 = int_to_ptr.vmem [resolvable:$false] %s2764_s23 }
  0xa1   : > { %s2766_s17 = scalar_lea.vmem %s2765_s23, 128  ;;  %p2767_p4 = scmp.lt.s32.totalorder %s3144_s19, %s2765_s23 }
  0xa2   : > { %p2762_p3 = pnand %p2760_p12, %p2746_p1  ;;  %p2768_p13 = scmp.lt.s32.totalorder %s2766_s17, %s2759_s25 }
  0xa4   : > { %p2763_p10 = pneg %p2762_p3  ;;  %p2769_p0 = por %p2768_p13, %p2767_p4 }
  0xa6   : > { %p2770_p2 = pnand %p2769_p0, %p2763_p10 }
  0xa8   : > { %2773 = shalt.err (!%p2770_p2)
}
  0xa9   : > { %2535 = dma.hbm_to_vmem [thread:$0]  (!%p3148_p11), %s3142_s16, 64, %s3144_s19, %s560_s6  }
  0xaa   : > { %p3538_p8 = scmp.ne.s32.totalorder %s3525_s20, 0 }
  0xab   : > { %s3180_s7 = sand.u32 (!%p3538_p8), 1, %s2840_s28  }
  0xac   : > { %579 = sbr.rel (%p3538_p8) target bundleno = 2632 (0xa48), region = 92  ;;  %s2306_s24 = sshll.u32 (!%p3538_p8), %s3180_s7, 2 }
  0xad   : > { %s582_s15 = scalar_lea.sflag (!%p3538_p8), [#allocation3], %s3180_s7  ;;  %s3184_s22 = scalar_lea.vmem (!%p3538_p8), [#allocation2], %s2306_s24 }
  0xb3   : > { %2819 = dma.done.wait (%p3123_p6), %s582_s15, 64  }
  0xb4   : > { %2821 = vsyncadd (%p3123_p6), %s582_s15, 4294967232  ;;  %p3539_p4 = scmp.eq.s32.totalorder %s2984_s1, 0 }
  0xb6   : > { %2823 = dma.done.wait (%p3539_p4), [#allocation6], 272   ;;  %p3540_p10 = pmov %p3539_p4 }
  0xb7   : > { %p3541_p11 = pmov %p3539_p4 }
  0xb8   : > { %2825 = vsyncadd (%p3540_p10), [#allocation6], 4294967024 }
  0xb9   : > { %2827 = dma.done.wait (%p3541_p11), [#allocation9], 272   ;;  %p3542_p1 = pmov %p3539_p4 }
  0xba   : > { %p658_p5 = scmp.lt.s32.totalorder %s2984_s1, 1  ;;  %v2857_v0 = vmov 0.0   ;;  %vm2858_vm0 = vmmov 0   ;;  %v2598_v1 = vld [vmem:[%s3490_s4] sm:$0xff]   ;;  %s3543_s25 = sld [smem:[#allocation16_spill]]  ;;  %v2600_v3 = vld [vmem:[%s3490_s4 + $0x8] sm:$0xff]   ;;  %v873_v29 = vlaneseq }
  0xbb   : > { %2829 = vsyncadd (%p3542_p1), [#allocation9], 4294967024  ;;  %2407 = vmatprep.subr.bf16.mxu1 %v2857_v0  ;;  %2399 = vmatprep.subr.bf16.mxu0 %v2857_v0  ;;  %s3544_s24 = sld [smem:[#allocation18_spill]]  ;;  %vm688_vm1 = vcmask 261120   ;;  %v2602_v7 = vld [vmem:[#allocation5] sm:$0xff]   ;;  %v2603_v8 = vld [vmem:[#allocation5 + $0x8] sm:$0xff]  }
  0xbc   : > { %2411 = vmatprep.mubr.msk.bf16.mxu1 %vm2858_vm0, %v2857_v0  ;;  %s659_s6 = scalar_select %p658_p5, %s2984_s1, 1  ;;  %2403 = vmatprep.mubr.msk.bf16.mxu0 %vm2858_vm0, %v2857_v0  ;;  %v2317_v9 = vld [vmem:[%s3491_s5] ss:$0 sm:$0xff]  ;;  %v2321_v21 = vld [vmem:[#allocation7] ss:$0 sm:$0xff]  ;;  %v874_v33 = vshrl.u32 %v873_v29, 7 }
  0xbd   : > { %2408 = vmatpush3.bf16.msra.mxu1 %v2598_v1  ;;  %s3545_s3 = sld [smem:[#allocation19_spill]]  ;;  %s2859_s11 = smov 104   ;;  %v2862_v27 = vmov 1983009808   ;;  %v2863_v30 = vmov 1934713408  }
  0xbe   : > { %s2312_s20 = sshll.u32 %s659_s6, 3  ;;  %2409 = vmatprep.subr.bf16.mxu1 %v2857_v0  ;;  %v871_v28 = vunpack.c.l.s4 %v2862_v27  ;;  %v903_v31 = vunpack.c.l.s4 %v2863_v30  ;;  %vm1310_vm2 = vcmask 64512   ;;  %vm1538_vm3 = vcmask 1043456   ;;  %s2865_s23 = smov 8  }
  0xbf   : > { %s2866_s17 = smov 24   ;;  %vm1877_vm4 = vcmask 130048   ;;  %vm1879_vm5 = vcmask 195584   ;;  %s3547_s15 = sld [smem:[#allocation26_spill]]  ;;  %vm2087_vm6 = vcmask 523264  }
  0xc0   : > { %s661_s21 = scalar_lea.vmem %s3543_s25, %s2312_s20  ;;  %s2860_s25 = smov 120   ;;  %v872_v32 = vunpack.c.0.s8 %v871_v28  ;;  %v904_v36 = vunpack.c.0.s8 %v903_v31 }
  0xc1   : > { %v2599_v2 = vld [vmem:[%s3544_s24] sm:$0xff]   ;;  %v2601_v5 = vld [vmem:[%s3544_s24 + $0x8] sm:$0xff]   ;;  %2410 = vmatpush3.bf16.msra.mxu1 %v2600_v3  ;;  %s3550_s6 = sld [smem:[#allocation27_spill]]  ;;  %s3551_s20 = sld [smem:[#allocation28_spill]] }
  0xc2   : > { %2400 = vmatpush3.bf16.msra.mxu0 %v2599_v2  ;;  %v3219_v4 = vld [vmem:[%s661_s21] sm:$0xff]  ;;  %2423 = vmatprep.subr.bf16.mxu1 %v2857_v0  ;;  %s2861_s21 = smov 112   ;;  %v3253_v37 = vsub.s32 %v872_v32, %v874_v33  ;;  %v3255_v44 = vsub.s32 %v904_v36, %v874_v33  ;;  %s2360_s16 = sshll.u32 %s2984_s1, 7 }
  0xc3   : > { %2401 = vmatprep.subr.bf16.mxu0 %v2857_v0  ;;  %v664_v6 = vpack.c.bf16 %v3219_v4, %v3219_v4  ;;  %v2313_v11 = vld [vmem:[%s3545_s3] ss:$0 sm:$0xff]  ;;  %p3553_p7 = scmp.ne.s32.totalorder %s3534_s26, 0  ;;  %s2867_s1 = smov [#allocation11]  }
  0xc5   : > { %2412 = vmatmul.mubr.msk.bf16.vlgmr.msra.gmra.mrb[0].mxu1 %vm688_vm1, %v664_v6 }
  0xc6   : > { %2402 = vmatpush3.bf16.msra.mxu0 %v2601_v5  ;;  %2425 = vmatprep.mubr.msk.bf16.mxu1 %vm2858_vm0, %v2857_v0 }
  0xc7   : > { %2415 = vmatprep.subr.bf16.mxu0 %v2857_v0 }
  0xc9   : > { %2404 = vmatmul.mubr.msk.bf16.vlgmr.msra.gmra.mrb[0].mxu0 %vm688_vm1, %v664_v6 }
  0xca   : > { %2419 = vmatprep.mubr.msk.bf16.mxu0 %vm2858_vm0, %v2857_v0  ;;  %2416 = vmatpush3.bf16.msra.mxu0 %v2602_v7 }
  0xcb   : > { %2417 = vmatprep.subr.bf16.mxu0 %v2857_v0 }
  0xce   : > { %2418 = vmatpush3.bf16.msra.mxu0 %v2603_v8 }
  0xcf   : > { %2429 = vmatprep.subr.bf16.mxu0 %v2857_v0 }
  0xd1   : > { %2420 = vmatmul.mubr.msk.bf16.vlgmr.msra.gmra.mrb[4].mxu0 %vm688_vm1, %v664_v6 }
  0xd2   : > { %2431 = vmatprep.mubr.msk.bf16.mxu0 %vm2858_vm0, %v2857_v0 }
 0x198   : > { %v789_v10 = vpop.f32.mrb[0].mxu1 }
 0x199   : > { %v790_v12 = vadd.f32 %v2317_v9, %v789_v10  ;;  %v2413_v13 = vpop.f32.mrb[1].mxu1 }
 0x19a   : > { %v792_v15 = vpop.f32.mrb[2].mxu1 }
 0x19b   : > { %1015 = vrot.lane.b32.xlu1 %v790_v12, %s2859_s11  ;;  %1009 = vrot.lane.b32.xlu0 %v790_v12, %s2860_s25  ;;  %v2414_v17 = vpop.f32.mrb[3].mxu1 }
 0x19c   : > { %v726_v14 = vpop.f32.mrb[0].mxu0 }
 0x19d   : > { %v2405_v16 = vpop.f32.mrb[1].mxu0  ;;  %v727_v18 = vadd.f32 %v2313_v11, %v726_v14 }
 0x19e   : > { %v729_v19 = vpop.f32.mrb[2].mxu0 }
 0x19f   : > { %v2406_v20 = vpop.f32.mrb[3].mxu0  ;;  %1012 = vrot.lane.b32.xlu0 %v790_v12, %s2861_s21  ;;  %859 = vrot.lane.b32.xlu1 %v727_v18, %s2860_s25 }
 0x1a3   : > { %862 = vrot.lane.b32.xlu0 %v727_v18, %s2861_s21  ;;  %865 = vrot.lane.b32.xlu1 %v727_v18, %s2859_s11 }
 0x1a4   : > { %v852_v22 = vpop.f32.mrb[4].mxu0 }
 0x1a5   : > { %v3250_v23 = vadd.f32 %v2321_v21, %v852_v22  ;;  %v2421_v24 = vpop.f32.mrb[5].mxu0 }
 0x1a6   : > { %v855_v25 = vpop.f32.mrb[6].mxu0 }
 0x1a7   : > { %v2422_v26 = vpop.f32.mrb[7].mxu0  ;;  %1159 = vrot.lane.b32.xlu0 %v3250_v23, %s2860_s25 }
 0x20d   : > { %v1016_v34 = vpop.permute.xlu1 %1015  ;;  %v1010_v35 = vpop.permute.xlu0 %1009 }
 0x20e   : > { %v1034_v38 = vcombine.low %v1010_v35, %v1016_v34  ;;  %v1035_v39 = vcombine.high %v1010_v35, %v1016_v34 }
 0x210   : > { %v1042_v45 = vrot.slane %v1034_v38, %v3253_v37  ;;  %v1049_v46 = vrot.slane %v1035_v39, %v3253_v37 }
 0x211   : > { %v1013_v40 = vpop.permute.xlu0 %1012  ;;  %v860_v41 = vpop.permute.xlu1 %859 }
 0x212   : > { %v1018_v42 = vcombine.low %v790_v12, %v1013_v40  ;;  %v1019_v43 = vcombine.high %v790_v12, %v1013_v40 }
 0x214   : > { %v1026_v47 = vrot.slane %v1018_v42, %v3253_v37  ;;  %v1033_v48 = vrot.slane %v1019_v43, %v3253_v37 }
 0x215   : > { %v863_v49 = vpop.permute.xlu0 %862  ;;  %v866_v50 = vpop.permute.xlu1 %865 }
 0x216   : > { %v1050_v51 = vcombine.low %v1026_v47, %v1042_v45  ;;  %v1051_v52 = vcombine.high %v1026_v47, %v1042_v45  ;;  %v1066_v53 = vcombine.low %v1033_v48, %v1049_v46  ;;  %v1067_v54 = vcombine.high %v1033_v48, %v1049_v46 }
 0x217   : > { %v868_v55 = vcombine.low %v727_v18, %v863_v49  ;;  %v869_v56 = vcombine.high %v727_v18, %v863_v49  ;;  %v884_v57 = vcombine.low %v860_v41, %v866_v50  ;;  %v885_v58 = vcombine.high %v860_v41, %v866_v50 }
 0x218   : > { %v1058_v59 = vrot.slane %v1050_v51, %v3255_v44  ;;  %v1065_v60 = vrot.slane %v1051_v52, %v3255_v44  ;;  %v1074_v61 = vrot.slane %v1066_v53, %v3255_v44  ;;  %v1081_v62 = vrot.slane %v1067_v54, %v3255_v44 }
 0x219   : > { %v876_v63 = vrot.slane %v868_v55, %v3253_v37  ;;  %v883_v1 = vrot.slane %v869_v56, %v3253_v37  ;;  %v892_v2 = vrot.slane %v884_v57, %v3253_v37  ;;  %v899_v3 = vrot.slane %v885_v58, %v3253_v37 }
 0x21a   : > { %v1086_v5 = vcombine.low %v1058_v59, %v1065_v60  ;;  %v2327_v6 = vcombine.high %v1058_v59, %v1065_v60  ;;  %v1102_v7 = vcombine.low %v1074_v61, %v1081_v62  ;;  %v2328_v8 = vcombine.high %v1074_v61, %v1081_v62 }
 0x21b   : > { %v900_v9 = vcombine.low %v876_v63, %v892_v2  ;;  %v901_v10 = vcombine.high %v876_v63, %v892_v2  ;;  %v916_v11 = vcombine.low %v883_v1, %v899_v3  ;;  %v917_v12 = vcombine.high %v883_v1, %v899_v3 }
 0x21c   : > { %v1093_v13 = vrot.slane %v1086_v5, %v3253_v37  ;;  %v1101_v14 = vrot.slane %v2327_v6, %v3253_v37  ;;  %v1109_v15 = vrot.slane %v1102_v7, %v3253_v37  ;;  %v1117_v16 = vrot.slane %v2328_v8, %v3253_v37  ;;  %v1308_v6 = vld [vmem:[%s3184_s22] sm:$0xf]  ;;  %s2864_s22 = smov 16  }
 0x21d   : > { %v908_v17 = vrot.slane %v900_v9, %v3255_v44  ;;  %v915_v18 = vrot.slane %v901_v10, %v3255_v44  ;;  %v924_v19 = vrot.slane %v916_v11, %v3255_v44  ;;  %v931_v20 = vrot.slane %v917_v12, %v3255_v44 }
 0x21e   : > { %v1118_v21 = vcombine.low %v1093_v13, %v1101_v14  ;;  %v1134_v22 = vcombine.low %v1109_v15, %v1117_v16  ;;  %v1119_v24 = vcombine.high %v1093_v13, %v1101_v14  ;;  %v1135_v25 = vcombine.high %v1109_v15, %v1117_v16 }
 0x21f   : > { %v936_v26 = vcombine.low %v908_v17, %v915_v18  ;;  %v2325_v27 = vcombine.high %v908_v17, %v915_v18  ;;  %v952_v28 = vcombine.low %v924_v19, %v931_v20  ;;  %v2326_v29 = vcombine.high %v924_v19, %v931_v20 }
 0x220   : > { %v1126_v30 = vrot.slane %v1118_v21, %v3255_v44  ;;  %v1142_v31 = vrot.slane %v1134_v22, %v3255_v44  ;;  %v1133_v39 = vrot.slane %v1119_v24, %v3255_v44  ;;  %v1149_v40 = vrot.slane %v1135_v25, %v3255_v44 }
 0x221   : > { %v943_v32 = vrot.slane %v936_v26, %v3253_v37  ;;  %v951_v33 = vrot.slane %v2325_v27, %v3253_v37  ;;  %v959_v34 = vrot.slane %v952_v28, %v3253_v37  ;;  %v967_v35 = vrot.slane %v2326_v29, %v3253_v37 }
 0x222   : > { %v1150_v36 = vcombine.low %v1126_v30, %v1142_v31  ;;  %v1151_v38 = vcombine.high %v1126_v30, %v1142_v31  ;;  %v1152_v50 = vcombine.low %v1133_v39, %v1149_v40  ;;  %v1153_v51 = vcombine.high %v1133_v39, %v1149_v40 }
 0x223   : > { %v968_v41 = vcombine.low %v943_v32, %v951_v33  ;;  %v984_v42 = vcombine.low %v959_v34, %v967_v35  ;;  %v969_v52 = vcombine.high %v943_v32, %v951_v33  ;;  %v985_v53 = vcombine.high %v959_v34, %v967_v35  ;;  %v1160_v33 = vpop.permute.xlu0 %1159 }
 0x224   : > { %v1154_v43 = vpack.c.bf16 %v1150_v36, %v1150_v36  ;;  %v1155_v45 = vpack.c.bf16 %v1151_v38, %v1151_v38  ;;  %v1156_v56 = vpack.c.bf16 %v1152_v50, %v1152_v50  ;;  %v1157_v57 = vpack.c.bf16 %v1153_v51, %v1153_v51 }
 0x225   : > { %v976_v46 = vrot.slane %v968_v41, %v3255_v44  ;;  %v992_v47 = vrot.slane %v984_v42, %v3255_v44  ;;  %v983_v60 = vrot.slane %v969_v52, %v3255_v44  ;;  %v999_v61 = vrot.slane %v985_v53, %v3255_v44 }
 0x226   : > { %v1315_v48 = vsel %vm1310_vm2, %v1154_v43, 0  ;;  %v1361_v49 = vsel %vm1310_vm2, %v1155_v45, 0  ;;  %v1407_v62 = vsel %vm1310_vm2, %v1156_v56, 0  ;;  %v1453_v63 = vsel %vm1310_vm2, %v1157_v57, 0 }
 0x227   : > { %2424 = vmatpush3.bf16.xpose.msra.mxu1 %v1315_v48  ;;  %2430 = vmatpush3.bf16.xpose.msra.mxu0 %v1361_v49  ;;  %v1000_v54 = vcombine.low %v976_v46, %v992_v47  ;;  %v1001_v55 = vcombine.high %v976_v46, %v992_v47  ;;  %v1002_v1 = vcombine.low %v983_v60, %v999_v61  ;;  %v1309_v7 = vunpack.c.l.bf16 %v1308_v6 }
 0x228   : > { %2435 = vmatprep.subr.bf16.mxu1 %v2857_v0  ;;  %2441 = vmatprep.subr.bf16.mxu0 %v2857_v0  ;;  %v1003_v2 = vcombine.high %v983_v60, %v999_v61 }
 0x229   : > { %v1004_v58 = vpack.c.bf16 %v1000_v54, %v1000_v54  ;;  %v1005_v59 = vpack.c.bf16 %v1001_v55, %v1001_v55  ;;  %v1006_v3 = vpack.c.bf16 %v1002_v1, %v1002_v1 }
 0x22a   : > { %v1007_v5 = vpack.c.bf16 %v1003_v2, %v1003_v2 }
 0x22e   : > { %2426 = vmatmul.mubr.msk.bf16.vlgmr.msra.gmra.mrb[4].mxu1 %vm1310_vm2, %v1004_v58  ;;  %2432 = vmatmul.mubr.msk.bf16.vlgmr.msra.gmra.mrb[8].mxu0 %vm1310_vm2, %v1005_v59 }
 0x22f   : > { %2436 = vmatpush3.bf16.xpose.msra.mxu1 %v1407_v62  ;;  %2442 = vmatpush3.bf16.xpose.msra.mxu0 %v1453_v63 }
 0x230   : > { %2437 = vmatprep.mubr.msk.bf16.mxu1 %vm2858_vm0, %v2857_v0  ;;  %2443 = vmatprep.mubr.msk.bf16.mxu0 %vm2858_vm0, %v2857_v0 }
 0x231   : > { %2447 = vmatprep.subr.bf16.mxu1 %v2857_v0  ;;  %2453 = vmatprep.subr.bf16.mxu0 %v2857_v0 }
 0x236   : > { %2438 = vmatmul.mubr.msk.bf16.vlgmr.msra.gmra.mrb[8].mxu1 %vm1310_vm2, %v1006_v3  ;;  %2444 = vmatmul.mubr.msk.bf16.vlgmr.msra.gmra.mrb[12].mxu0 %vm1310_vm2, %v1007_v5 }
 0x237   : > { %2449 = vmatprep.mubr.msk.bf16.mxu1 %vm2858_vm0, %v2857_v0  ;;  %2455 = vmatprep.mubr.msk.bf16.mxu0 %vm2858_vm0, %v2857_v0 }
 0x301   : > { %v1351_v8 = vpop.f32.mrb[4].mxu1  ;;  %v1397_v9 = vpop.f32.mrb[8].mxu0 }
 0x302   : > { %v1352_v10 = vadd.f32 %v1351_v8, %v1309_v7  ;;  %v1398_v11 = vadd.f32 %v1397_v9, %v1309_v7  ;;  %v2427_v12 = vpop.f32.mrb[5].mxu1  ;;  %v2433_v13 = vpop.f32.mrb[9].mxu0 }
 0x303   : > { %v1354_v14 = vpop.f32.mrb[6].mxu1  ;;  %v1400_v15 = vpop.f32.mrb[10].mxu0 }
 0x304   : > { %v2428_v16 = vpop.f32.mrb[7].mxu1  ;;  %v2434_v17 = vpop.f32.mrb[11].mxu0  ;;  %v1495_v18 = vsel %vm1310_vm2, %v1352_v10, -inf  ;;  %v1498_v19 = vsel %vm1310_vm2, %v1398_v11, -inf }
 0x305   : > { %1496 = vmax.xlane.f32.xlu0 %v1495_v18  ;;  %1499 = vmax.xlane.f32.xlu1 %v1498_v19 }
 0x309   : > { %v1443_v20 = vpop.f32.mrb[8].mxu1  ;;  %v1489_v21 = vpop.f32.mrb[12].mxu0 }
 0x30a   : > { %v2439_v22 = vpop.f32.mrb[9].mxu1  ;;  %v2445_v24 = vpop.f32.mrb[13].mxu0  ;;  %v3316_v29 = vadd.f32 %v1443_v20, %v1309_v7  ;;  %v3318_v30 = vadd.f32 %v1489_v21, %v1309_v7 }
 0x30b   : > { %v1446_v25 = vpop.f32.mrb[10].mxu1  ;;  %v1492_v26 = vpop.f32.mrb[14].mxu0 }
 0x30c   : > { %v2440_v27 = vpop.f32.mrb[11].mxu1  ;;  %v2446_v28 = vpop.f32.mrb[15].mxu0  ;;  %v1501_v31 = vsel %vm1310_vm2, %v3316_v29, -inf  ;;  %v1504_v32 = vsel %vm1310_vm2, %v3318_v30, -inf }
 0x316   : > { %1162 = vrot.lane.b32.xlu1 %v3250_v23, %s2861_s21 }
 0x31b   : > { %1165 = vrot.lane.b32.xlu0 %v3250_v23, %s2859_s11  ;;  %s3548_s11 = sld [smem:[#allocation23_spill]] }
 0x33a   : > { %1502 = vmax.xlane.f32.xlu1 %v1501_v31  ;;  %1505 = vmax.xlane.f32.xlu0 %v1504_v32 }
 0x392   : > { %v1497_v34 = vpop.xlane.xlu0 %1496  ;;  %v1500_v35 = vpop.xlane.xlu1 %1499 }
 0x393   : > { %v1507_v36 = vsub.f32 %v1352_v10, %v1497_v34  ;;  %v1508_v38 = vsub.f32 %v1398_v11, %v1500_v35 }
 0x395   : > { %v1511_v39 = vmul.f32 1.442695, %v1507_v36  ;;  %v1513_v40 = vmul.f32 1.442695, %v1508_v38 }
 0x396   : > { %v1166_v41 = vpop.permute.xlu0 %1165  ;;  %v1163_v42 = vpop.permute.xlu1 %1162 }
 0x397   : > { %2612 = vpow2.f32 %v1511_v39  ;;  %v1184_v43 = vcombine.low %v1160_v33, %v1166_v41  ;;  %v1185_v45 = vcombine.high %v1160_v33, %v1166_v41  ;;  %v1168_v46 = vcombine.low %v3250_v23, %v1163_v42 }
 0x398   : > { %2614 = vpow2.f32 %v1513_v40  ;;  %v1169_v47 = vcombine.high %v3250_v23, %v1163_v42 }
 0x399   : > { %v1192_v48 = vrot.slane %v1184_v43, %v3253_v37  ;;  %v1199_v49 = vrot.slane %v1185_v45, %v3253_v37  ;;  %v1176_v50 = vrot.slane %v1168_v46, %v3253_v37 }
 0x39a   : > { %v1183_v51 = vrot.slane %v1169_v47, %v3253_v37 }
 0x39b   : > { %v1200_v52 = vcombine.low %v1176_v50, %v1192_v48  ;;  %v1201_v53 = vcombine.high %v1176_v50, %v1192_v48 }
 0x39c   : > { %v1216_v54 = vcombine.low %v1183_v51, %v1199_v49  ;;  %v1217_v55 = vcombine.high %v1183_v51, %v1199_v49 }
 0x39d   : > { %v1208_v56 = vrot.slane %v1200_v52, %v3255_v44  ;;  %v1215_v57 = vrot.slane %v1201_v53, %v3255_v44 }
 0x39e   : > { %v1224_v58 = vrot.slane %v1216_v54, %v3255_v44  ;;  %v1231_v23 = vrot.slane %v1217_v55, %v3255_v44 }
 0x39f   : > { %v1236_v59 = vcombine.low %v1208_v56, %v1215_v57  ;;  %v2329_v60 = vcombine.high %v1208_v56, %v1215_v57 }
 0x3a0   : > { %v1252_v61 = vcombine.low %v1224_v58, %v1231_v23  ;;  %v2330_v62 = vcombine.high %v1224_v58, %v1231_v23 }
 0x3a1   : > { %v2613_v63 = vpop.eup %2612  ;;  %v1243_v1 = vrot.slane %v1236_v59, %v3253_v37  ;;  %v1251_v2 = vrot.slane %v2329_v60, %v3253_v37 }
 0x3a2   : > { %v2615_v3 = vpop.eup %2614  ;;  %v1259_v5 = vrot.slane %v1252_v61, %v3253_v37  ;;  %v1267_v6 = vrot.slane %v2330_v62, %v3253_v37  ;;  %v1519_v7 = vsel %vm1310_vm2, %v2613_v63, 0.0  ;;  %v1531_v28 = vpack.c.bf16 %v2613_v63, %v2613_v63 }
 0x3a3   : > { %v1522_v8 = vsel %vm1310_vm2, %v2615_v3, 0.0  ;;  %1520 = vadd.xlane.f32.xlu0 %v1519_v7  ;;  %v1268_v9 = vcombine.low %v1243_v1, %v1251_v2  ;;  %v1269_v10 = vcombine.high %v1243_v1, %v1251_v2  ;;  %v1532_v31 = vpack.c.bf16 %v2615_v3, %v2615_v3 }
 0x3a4   : > { %1523 = vadd.xlane.f32.xlu1 %v1522_v8  ;;  %v1284_v11 = vcombine.low %v1259_v5, %v1267_v6  ;;  %v1285_v12 = vcombine.high %v1259_v5, %v1267_v6 }
 0x3a5   : > { %v1276_v13 = vrot.slane %v1268_v9, %v3255_v44  ;;  %v1283_v14 = vrot.slane %v1269_v10, %v3255_v44 }
 0x3a6   : > { %v1292_v15 = vrot.slane %v1284_v11, %v3255_v44  ;;  %v1299_v16 = vrot.slane %v1285_v12, %v3255_v44 }
 0x3a8   : > { %v1300_v17 = vcombine.low %v1276_v13, %v1292_v15  ;;  %v1301_v18 = vcombine.high %v1276_v13, %v1292_v15  ;;  %v1302_v19 = vcombine.low %v1283_v14, %v1299_v16  ;;  %v1303_v20 = vcombine.high %v1283_v14, %v1299_v16 }
 0x3aa   : > { %v1304_v21 = vpack.c.bf16 %v1300_v17, %v1300_v17  ;;  %v1305_v22 = vpack.c.bf16 %v1301_v18, %v1301_v18  ;;  %v1306_v26 = vpack.c.bf16 %v1302_v19, %v1302_v19  ;;  %v1307_v27 = vpack.c.bf16 %v1303_v20, %v1303_v20 }
 0x3ac   : > { %v1540_v24 = vsel %vm1538_vm3, %v1304_v21, 0  ;;  %v1586_v25 = vsel %vm1538_vm3, %v1305_v22, 0  ;;  %v1632_v32 = vsel %vm1538_vm3, %v1306_v26, 0  ;;  %v1678_v33 = vsel %vm1538_vm3, %v1307_v27, 0 }
 0x3ad   : > { %2448 = vmatpush3.bf16.msra.mxu1 %v1540_v24  ;;  %2454 = vmatpush3.bf16.msra.mxu0 %v1586_v25  ;;  %v2604_v24 = vld [vmem:[#allocation8] sm:$0xff]  }
 0x3ae   : > { %2459 = vmatprep.subr.bf16.mxu1 %v2857_v0  ;;  %2465 = vmatprep.subr.bf16.mxu0 %v2857_v0 }
 0x3b0   : > { %2450 = vmatmul.mubr.msk.bf16.vlgmr.msra.gmra.mrb[12].mxu1 %vm1310_vm2, %v1531_v28  ;;  %2456 = vmatmul.mubr.msk.bf16.vlgmr.msra.gmra.mrb[16].mxu0 %vm1310_vm2, %v1532_v31 }
 0x3b1   : > { %2460 = vmatpush3.bf16.msra.mxu1 %v1632_v32  ;;  %2466 = vmatpush3.bf16.msra.mxu0 %v1678_v33 }
 0x3b2   : > { %2461 = vmatprep.mubr.msk.bf16.mxu1 %vm2858_vm0, %v2857_v0  ;;  %2467 = vmatprep.mubr.msk.bf16.mxu0 %vm2858_vm0, %v2857_v0 }
 0x3b3   : > { %2471 = vmatprep.subr.bf16.mxu1 %v2857_v0  ;;  %2479 = vmatprep.subr.bf16.mxu0 %v2857_v0 }
 0x3c7   : > { %v1503_v34 = vpop.xlane.xlu1 %1502  ;;  %v1506_v35 = vpop.xlane.xlu0 %1505 }
 0x3c8   : > { %v1509_v36 = vsub.f32 %v3316_v29, %v1503_v34  ;;  %v1510_v38 = vsub.f32 %v3318_v30, %v1506_v35  ;;  %v2605_v35 = vld [vmem:[#allocation8 + $0x8] sm:$0xff]  }
 0x3ca   : > { %v1515_v39 = vmul.f32 1.442695, %v1509_v36  ;;  %v1517_v40 = vmul.f32 1.442695, %v1510_v38 }
 0x3cc   : > { %2616 = vpow2.f32 %v1515_v39 }
 0x3cd   : > { %2618 = vpow2.f32 %v1517_v40 }
 0x3d6   : > { %v2617_v41 = vpop.eup %2616 }
 0x3d7   : > { %v2619_v42 = vpop.eup %2618  ;;  %v1525_v43 = vsel %vm1310_vm2, %v2617_v41, 0.0  ;;  %v1533_v45 = vpack.c.bf16 %v2617_v41, %v2617_v41 }
 0x3d8   : > { %1526 = vadd.xlane.f32.xlu0 %v1525_v43  ;;  %v1528_v46 = vsel %vm1310_vm2, %v2619_v42, 0.0  ;;  %v1534_v47 = vpack.c.bf16 %v2619_v42, %v2619_v42 }
 0x3d9   : > { %1529 = vadd.xlane.f32.xlu1 %v1528_v46  ;;  %2462 = vmatmul.mubr.msk.bf16.vlgmr.msra.gmra.mrb[16].mxu1 %vm1310_vm2, %v1533_v45 }
 0x3da   : > { %2468 = vmatmul.mubr.msk.bf16.vlgmr.msra.gmra.mrb[20].mxu0 %vm1310_vm2, %v1534_v47  ;;  %2475 = vmatprep.mubr.msk.bf16.mxu1 %vm2858_vm0, %v2857_v0 }
 0x3db   : > { %2483 = vmatprep.mubr.msk.bf16.mxu0 %vm2858_vm0, %v2857_v0  ;;  %2472 = vmatpush3.bf16.msra.mxu1 %v2604_v24 }
 0x3dc   : > { %2473 = vmatprep.subr.bf16.mxu1 %v2857_v0 }
 0x3df   : > { %2474 = vmatpush3.bf16.msra.mxu1 %v2605_v35 }
 0x3e0   : > { %2487 = vmatprep.subr.bf16.mxu1 %v2857_v0 }
 0x430   : > { %v1521_v54 = vpop.xlane.xlu0 %1520 }
 0x431   : > { %v1524_v55 = vpop.xlane.xlu1 %1523  ;;  %2620 = vrcp.f32 %v1521_v54 }
 0x432   : > { %2622 = vrcp.f32 %v1524_v55 }
 0x43b   : > { %v2621_v58 = vpop.eup %2620 }
 0x43c   : > { %v2623_v23 = vpop.eup %2622 }
 0x465   : > { %v1527_v56 = vpop.xlane.xlu0 %1526 }
 0x466   : > { %v1530_v57 = vpop.xlane.xlu1 %1529  ;;  %2624 = vrcp.f32 %v1527_v56 }
 0x467   : > { %2626 = vrcp.f32 %v1530_v57  ;;  %v2341_v57 = vld [vmem:[#allocation10] ss:$0 sm:$0xff] }
 0x470   : > { %v2625_v59 = vpop.eup %2624 }
 0x471   : > { %v2627_v61 = vpop.eup %2626 }
 0x483   : > { %v1576_v29 = vpop.f32.mrb[12].mxu1  ;;  %v1622_v30 = vpop.f32.mrb[16].mxu0 }
 0x484   : > { %v2451_v48 = vpop.f32.mrb[13].mxu1  ;;  %v2457_v49 = vpop.f32.mrb[17].mxu0  ;;  %v1724_v62 = vmul.f32 %v2621_v58, %v1576_v29  ;;  %v1725_v3 = vmul.f32 %v2623_v23, %v1622_v30 }
 0x485   : > { %v1579_v50 = vpop.f32.mrb[14].mxu1  ;;  %v1625_v51 = vpop.f32.mrb[18].mxu0 }
 0x486   : > { %v2452_v52 = vpop.f32.mrb[15].mxu1  ;;  %v2458_v53 = vpop.f32.mrb[19].mxu0 }
 0x4ac   : > { %v1668_v60 = vpop.f32.mrb[16].mxu1 }
 0x4ad   : > { %v1726_v63 = vmul.f32 %v2625_v59, %v1668_v60  ;;  %v1714_v1 = vpop.f32.mrb[20].mxu0  ;;  %v2463_v2 = vpop.f32.mrb[17].mxu1 }
 0x4ae   : > { %v1727_v5 = vmul.f32 %v2627_v61, %v1714_v1  ;;  %v2469_v6 = vpop.f32.mrb[21].mxu0  ;;  %v1671_v7 = vpop.f32.mrb[18].mxu1 }
 0x4af   : > { %v1728_v8 = vcombine.low %v1724_v62, %v1726_v63  ;;  %v1729_v9 = vcombine.high %v1724_v62, %v1726_v63  ;;  %v1717_v10 = vpop.f32.mrb[22].mxu0  ;;  %v2464_v11 = vpop.f32.mrb[19].mxu1  ;;  %v2606_v7 = vld [vmem:[%s3496_s10] sm:$0xff]  }
 0x4b0   : > { %v1744_v12 = vcombine.low %v1725_v3, %v1727_v5  ;;  %v1745_v13 = vcombine.high %v1725_v3, %v1727_v5  ;;  %v2470_v14 = vpop.f32.mrb[23].mxu0  ;;  %2480 = vmatpush3.bf16.msra.mxu0 %v2606_v7 }
 0x4b1   : > { %v1736_v15 = vrot.slane %v1728_v8, %v3253_v37  ;;  %v1743_v16 = vrot.slane %v1729_v9, %v3253_v37  ;;  %v2607_v8 = vld [vmem:[%s3496_s10 + $0x8] sm:$0xff]   ;;  %2481 = vmatprep.subr.bf16.mxu0 %v2857_v0 }
 0x4b2   : > { %v1752_v17 = vrot.slane %v1744_v12, %v3253_v37  ;;  %v1759_v18 = vrot.slane %v1745_v13, %v3253_v37  ;;  %v2609_v9 = vld [vmem:[%s3498_s12 + $0x8] sm:$0xff]  }
 0x4b4   : > { %v1760_v19 = vcombine.low %v1736_v15, %v1752_v17  ;;  %v1761_v20 = vcombine.high %v1736_v15, %v1752_v17  ;;  %v1776_v21 = vcombine.low %v1743_v16, %v1759_v18  ;;  %v1777_v22 = vcombine.high %v1743_v16, %v1759_v18  ;;  %2482 = vmatpush3.bf16.msra.mxu0 %v2607_v8  ;;  %v2346_v16 = vld [vmem:[%s3547_s15] ss:$0 sm:$0xff] }
 0x4b6   : > { %v1768_v25 = vrot.slane %v1760_v19, %v3255_v44  ;;  %v1775_v26 = vrot.slane %v1761_v20, %v3255_v44  ;;  %v1784_v27 = vrot.slane %v1776_v21, %v3255_v44  ;;  %v1791_v28 = vrot.slane %v1777_v22, %v3255_v44  ;;  %v2610_v20 = vld [vmem:[%s3498_s12 + $0x10] sm:$0xff]   ;;  %v2611_v21 = vld [vmem:[%s3498_s12 + $0x18] sm:$0xff]   ;;  %v2347_v22 = vld [vmem:[%s3548_s11] ss:$0 sm:$0xff] }
 0x4b8   : > { %v1796_v31 = vcombine.low %v1768_v25, %v1775_v26  ;;  %v2339_v32 = vcombine.high %v1768_v25, %v1775_v26  ;;  %v1812_v33 = vcombine.low %v1784_v27, %v1791_v28  ;;  %v2340_v34 = vcombine.high %v1784_v27, %v1791_v28 }
 0x4ba   : > { %v1803_v36 = vrot.slane %v1796_v31, %v3253_v37  ;;  %v1811_v38 = vrot.slane %v2339_v32, %v3253_v37  ;;  %v1819_v39 = vrot.slane %v1812_v33, %v3253_v37  ;;  %v1827_v40 = vrot.slane %v2340_v34, %v3253_v37 }
 0x4bc   : > { %v1829_v41 = vcombine.high %v1803_v36, %v1811_v38  ;;  %v1845_v42 = vcombine.high %v1819_v39, %v1827_v40  ;;  %v1828_v43 = vcombine.low %v1803_v36, %v1811_v38  ;;  %v1844_v45 = vcombine.low %v1819_v39, %v1827_v40 }
 0x4be   : > { %v1843_v46 = vrot.slane %v1829_v41, %v3255_v44  ;;  %v1859_v47 = vrot.slane %v1845_v42, %v3255_v44  ;;  %v1836_v29 = vrot.slane %v1828_v43, %v3255_v44  ;;  %v1852_v30 = vrot.slane %v1844_v45, %v3255_v44 }
 0x4c0   : > { %v1862_v48 = vcombine.low %v1843_v46, %v1859_v47  ;;  %v1861_v49 = vcombine.high %v1836_v29, %v1852_v30  ;;  %v1863_v50 = vcombine.high %v1843_v46, %v1859_v47  ;;  %v1860_v51 = vcombine.low %v1836_v29, %v1852_v30 }
 0x4c2   : > { %1869 = vrot.lane.b32.xlu1 %v1862_v48, %s2864_s22  ;;  %1865 = vrot.lane.b32.xlu0 %v1861_v49, %s2865_s23  ;;  %s3546_s22 = sld [smem:[#allocation25_spill]]  ;;  %s2311_s23 = sshll.u32 %s3180_s7, 3  ;;  %v2357_v49 = vld [vmem:[%s3550_s6] ss:$0 sm:$0xff] }
 0x4c3   : > { %s657_s19 = scalar_lea.vmem [#allocation11], %s2311_s23  ;;  %s2778_s23 = sshll.u32 %s2867_s1, 4  ;;  %s2779_s23 = int_to_ptr.vmem [resolvable:$false] %s2778_s23 }
 0x4c4   : > { %s2176_s11 = sshll.u32 %s657_s19, 4  ;;  %s2780_s6 = scalar_lea.vmem %s2779_s23, 256  ;;  %s3443_s11 = int_to_ptr.vmem [resolvable:$true] %s2176_s11 }
 0x4c5   : > { %s2774_s15 = scalar_lea.vmem %s3443_s11, 128  ;;  %p2781_p3 = scmp.lt.s32.totalorder %s3443_s11, %s2779_s23 }
 0x4c6   : > { %1873 = vrot.lane.b32.xlu1 %v1863_v50, %s2866_s17  ;;  %s2163_s17 = scalar_lea.sflag [#allocation4], %s3180_s7  ;;  %p2775_p6 = scmp.ne.s32.totalorder %s3443_s11, %s2774_s15 }
 0x4c7   : > { %p2782_p13 = scmp.lt.s32.totalorder %s2780_s6, %s2774_s15 }
 0x4c8   : > { %v2345_v14 = vld [vmem:[%s3546_s22] ss:$0 sm:$0xff]  ;;  %s3549_s22 = sld [smem:[#allocation24_spill]]  ;;  %p2776_p9 = pnand %p2775_p6, %p3553_p7 }
 0x4c9   : > { %p2783_p0 = por %p2782_p13, %p2781_p3 }
 0x4ca   : > { %p2777_p12 = pneg %p2776_p9 }
 0x4cc   : > { %p2784_p2 = pnand %p2783_p0, %p2777_p12 }
 0x534   : > { %v1870_v37 = vpop.permute.xlu1 %1869  ;;  %v1866_v52 = vpop.permute.xlu0 %1865 }
 0x535   : > { %v1876_v53 = vsel %vm1310_vm2, %v1860_v51, %v1866_v52  ;;  %v2358_v51 = vld [vmem:[%s3551_s20] ss:$0 sm:$0xff] }
 0x536   : > { %v1878_v55 = vsel %vm1877_vm4, %v1876_v53, %v1870_v37 }
 0x538   : > { %v1874_v54 = vpop.permute.xlu1 %1873 }
 0x539   : > { %v1880_v56 = vsel %vm1879_vm5, %v1878_v55, %v1874_v54 }
 0x53a   : > { %v1881_v44 = vpack.c.bf16 %v1880_v56, %v1880_v56 }
 0x53c   : > { %2476 = vmatmul.mubr.msk.bf16.vlgmr.msra.gmra.mrb[20].mxu1 %vm688_vm1, %v1881_v44 }
 0x53d   : > { %2495 = vmatprep.mubr.msk.bf16.mxu1 %vm2858_vm0, %v2857_v0 }
 0x60f   : > { %v1942_v58 = vpop.f32.mrb[20].mxu1 }
 0x610   : > { %v1943_v23 = vadd.f32 %v2341_v57, %v1942_v58  ;;  %v2477_v59 = vpop.f32.mrb[21].mxu1 }
 0x611   : > { %v1945_v60 = vpop.f32.mrb[22].mxu1 }
 0x612   : > { %v2478_v61 = vpop.f32.mrb[23].mxu1  ;;  %v1948_v62 = vadd.f32 %v1943_v23, %v3219_v4  ;;  %v2608_v4 = vld [vmem:[%s3498_s12] sm:$0xff]  }
 0x613   : > { %2488 = vmatpush3.bf16.msra.mxu1 %v2608_v4 }
 0x614   : > { %v1951_v63 = vsel %vm688_vm1, %v1948_v62, 0.0  ;;  %2489 = vmatprep.subr.bf16.mxu1 %v2857_v0 }
 0x615   : > { %1952 = vadd.xlane.f32.xlu0 %v1951_v63 }
 0x617   : > { %2490 = vmatpush3.bf16.msra.mxu1 %v2609_v9 }
 0x618   : > { %2491 = vmatprep.subr.bf16.mxu1 %v2857_v0 }
 0x61b   : > { %2492 = vmatpush3.bf16.msra.mxu1 %v2610_v20 }
 0x61c   : > { %2493 = vmatprep.subr.bf16.mxu1 %v2857_v0  ;;  %v2351_v0 = vld [vmem:[%s3549_s22] ss:$0 sm:$0xff]  ;;  %s3552_s22 = sld [smem:[#allocation29_spill]] }
 0x61f   : > { %2494 = vmatpush3.bf16.msra.mxu1 %v2611_v21 }
 0x622   : > { %s3441_s3 = scalar_lea.hbm %s3552_s22, %s2360_s16 }
 0x6a2   : > { %v1953_v1 = vpop.xlane.xlu0 %1952 }
 0x6a3   : > { %v1955_v2 = vmul.f32 0.03125, %v1953_v1 }
 0x6a5   : > { %v1956_v3 = vsub.f32 %v1948_v62, %v1955_v2 }
 0x6a7   : > { %v1957_v5 = vmul.f32 %v1956_v3, %v1956_v3 }
 0x6a9   : > { %v1958_v6 = vsel %vm688_vm1, %v1957_v5, 0.0 }
 0x6aa   : > { %1959 = vadd.xlane.f32.xlu1 %v1958_v6 }
 0x737   : > { %v1960_v10 = vpop.xlane.xlu1 %1959 }
 0x738   : > { %v1961_v11 = vmul.f32 0.03125, %v1960_v10 }
 0x73a   : > { %v1962_v12 = vadd.f32 1e-05, %v1961_v11 }
 0x73c   : > { %2628 = vrsqrt.f32 %v1962_v12 }
 0x746   : > { %v2629_v13 = vpop.eup %2628 }
 0x747   : > { %v1964_v15 = vmul.f32 %v2629_v13, %v1956_v3 }
 0x749   : > { %v1971_v17 = vmul.f32 %v2345_v14, %v1964_v15 }
 0x74b   : > { %v1978_v18 = vadd.f32 %v2346_v16, %v1971_v17 }
 0x74d   : > { %v1979_v19 = vpack.c.bf16 %v1978_v18, %v1978_v18 }
 0x74f   : > { %2484 = vmatmul.mubr.msk.bf16.vlgmr.msra.gmra.mrb[24].mxu0 %vm688_vm1, %v1979_v19 }
 0x822   : > { %v2040_v24 = vpop.f32.mrb[24].mxu0 }
 0x823   : > { %v2041_v25 = vadd.f32 %v2347_v22, %v2040_v24  ;;  %v2485_v26 = vpop.f32.mrb[25].mxu0 }
 0x824   : > { %v2043_v27 = vpop.f32.mrb[26].mxu0 }
 0x825   : > { %v2046_v28 = vmax.f32 %v2041_v25, 0.0  ;;  %v2486_v31 = vpop.f32.mrb[27].mxu0 }
 0x827   : > { %v2047_v32 = vpack.c.bf16 %v2046_v28, %v2046_v28 }
 0x829   : > { %2496 = vmatmul.mubr.msk.bf16.vlgmr.msra.gmra.mrb[24].mxu1 %vm2087_vm6, %v2047_v32 }
 0x8fc   : > { %v2125_v33 = vpop.f32.mrb[24].mxu1 }
 0x8fd   : > { %v2126_v34 = vadd.f32 %v2351_v0, %v2125_v33  ;;  %v2497_v35 = vpop.f32.mrb[25].mxu1 }
 0x8fe   : > { %v2128_v36 = vpop.f32.mrb[26].mxu1 }
 0x8ff   : > { %v2498_v38 = vpop.f32.mrb[27].mxu1  ;;  %v2131_v39 = vadd.f32 %v2126_v34, %v1978_v18 }
 0x901   : > { %v2134_v40 = vsel %vm688_vm1, %v2131_v39, 0.0 }
 0x902   : > { %2135 = vadd.xlane.f32.xlu0 %v2134_v40 }
 0x98f   : > { %v2136_v41 = vpop.xlane.xlu0 %2135 }
 0x990   : > { %v2137_v42 = vmul.f32 0.03125, %v2136_v41 }
 0x992   : > { %v2138_v43 = vsub.f32 %v2131_v39, %v2137_v42 }
 0x994   : > { %v2139_v45 = vmul.f32 %v2138_v43, %v2138_v43 }
 0x996   : > { %v2140_v46 = vsel %vm688_vm1, %v2139_v45, 0.0 }
 0x997   : > { %2141 = vadd.xlane.f32.xlu0 %v2140_v46 }
 0xa24   : > { %v2142_v47 = vpop.xlane.xlu0 %2141 }
 0xa25   : > { %v2143_v29 = vmul.f32 0.03125, %v2142_v47 }
 0xa27   : > { %v2144_v30 = vadd.f32 1e-05, %v2143_v29 }
 0xa29   : > { %2630 = vrsqrt.f32 %v2144_v30 }
 0xa33   : > { %v2631_v48 = vpop.eup %2630 }
 0xa34   : > { %v2146_v50 = vmul.f32 %v2631_v48, %v2138_v43 }
 0xa36   : > { %v2153_v37 = vmul.f32 %v2357_v49, %v2146_v50 }
 0xa38   : > { %v2160_v52 = vadd.f32 %v2358_v51, %v2153_v37 }
 0xa3a   : > { %2161 = vst.msk [vmem:[%s657_s19] sm:$0xff] %vm688_vm1, %v2160_v52 }
 0xa3b   : > { %2787 = shalt.err (!%p2784_p2)
}
 0xa3c   : > { %s2788_s7 = scalar_lea.hbm %s3441_s3, 128  ;;  %s2792_s20 = scalar_lea.hbm %s3552_s22, 256 }
 0xa3d   : > { %p2789_p8 = scmp.ne.s32.totalorder %s3441_s3, %s2788_s7  ;;  %p2793_p11 = scmp.lt.u32.totalorder %s3441_s3, %s3552_s22 }
 0xa3e   : > { %p2794_p1 = scmp.lt.u32.totalorder %s2792_s20, %s2788_s7  ;;  %p2796_p6 = scmp.lt.u32.totalorder %s2788_s7, %s3441_s3 }
 0xa3f   : > { %p2790_p4 = pnand %p2789_p8, %p3553_p7 }
 0xa40   : > { %p2795_p5 = por %p2794_p1, %p2793_p11 }
 0xa41   : > { %p2791_p10 = pneg %p2790_p4 }
 0xa42   : > { %p2797_p9 = por %p2796_p6, %p2795_p5 }
 0xa44   : > { %p2798_p12 = pnand %p2797_p9, %p2791_p10 }
 0xa46   : > { %2801 = shalt.err (!%p2798_p12)
}
 0xa47   : > { %2517 = dma.vmem_to_hbm [thread:$0]  (%p3553_p7), %s3443_s11, 128, %s3441_s3, %s2163_s17  }
 0xa48 PF: > { %s2188_s25 = sand.u32 1, %s2836_s27   ;;  %p3554_p3 = scmp.ne.s32.totalorder %s3535_s0, 0 }
 0xa49   : > { %p3555_p13 = scmp.ge.s32.totalorder %s2848_s30, 2  ;;  %s2189_s21 = scalar_lea.sflag [#allocation4], %s2188_s25 }
 0xa4b   : > { %p2537_p0 = pnand %p3555_p13, %p3554_p3 }
 0xa4d   : > { %2831 = dma.done.wait (!%p2537_p0), %s2189_s21, 128  }
 0xa4e   : > { %2833 = vsyncadd (!%p2537_p0), %s2189_s21, 4294967168  ;;  %p33_p2 = scmp.ge.s32.totalorder %s3104_s2, 4   ;;  %s3556_s27 = smov %s2840_s28 }
 0xa4f   : > { %s3557_s28 = smov %s2844_s29  ;;  %s3558_s29 = smov %s3115_s14 }
 0xa50   : > { %s3559_s30 = smov %s3104_s2  ;;  %35 = sbr.rel (!%p33_p2) target bundleno = 22 (0x16), region = 156 }
 0xa57   :  { %2194 = vsyncpa [#allocation3], 1 }
 0xa58   :  { %2196 = vsyncpa [#allocation3 + $0x1], 1 }
 0xa59   :  { %2197 = vsyncpa [#allocation6], 1 }
 0xa5a   :  { %2198 = vsyncpa [#allocation9], 1 }
 0xa5b   :  { %2199 = vsyncpa [#allocation4], 1 }
 0xa5c   :  { %2201 = vsyncpa [#allocation4 + $0x1], 1 }

</bundles_post_ra>
